<compile_context>
chip_gen: v6e
topology: v6e:2x2x1
jax: 0.10.0
libtpu: 0.0.40
codegen_flags: <defaults>
</compile_context>

<pallas_src>
import numpy as np
import jax
import jax.numpy as jnp
from jax import lax
from jax.experimental import pallas as pl
from jax.experimental.pallas import tpu as pltpu

_PAD = 2  # zero rows above/below the h staging scratch (covers tap offsets ±2)


# ----------------------------------------------------------------------------
# Fused 3-stage DownSample kernel (one batch element per grid step)
# ----------------------------------------------------------------------------
def _make_dyconv_kernel(n_stages=3):
    def kernel(x_ref, dw_ref, dwd_ref, g_ref, be_ref, wp_ref, bp_ref,
               wc_ref, bc_ref, out_ref, scr):
        C = x_ref.shape[-1]

        # Top padding rows of the h-staging scratch are zero for every stage
        # (never overwritten: stage writes start at row _PAD).
        scr[0:_PAD, :] = jnp.zeros((_PAD, C), jnp.float32)

        def stage(a, s):
            N = a.shape[0]
            ridx = lax.broadcasted_iota(jnp.int32, (N, 1), 0)

            def shift_down(v, k):    # result[l] = v[l - k], zero for l < k
                return jnp.where(ridx >= k, pltpu.roll(v, k, 0), 0.0)

            def shift_up(v, k):      # result[l] = v[l + k], zero for l >= N-k
                return jnp.where(ridx < N - k, pltpu.roll(v, N - k, 0), 0.0)

            # depthwise conv, kernel=3, pad=1, groups=C (f32 VPU math)
            dw = dw_ref[s]           # (3, C)
            y = (shift_down(a, 1) * dw[0:1]
                 + a * dw[1:2]
                 + shift_up(a, 1) * dw[2:3])

            # depthwise conv, kernel=3, dilation=3, pad=3, groups=C
            dwd = dwd_ref[s]
            z = (shift_down(y, 3) * dwd[0:1]
                 + y * dwd[1:2]
                 + shift_up(y, 3) * dwd[2:3])

            # LayerNorm over channels, eps=1e-6 — single-pass statistics so
            # the two reductions don't serialize (rsqrt goes to the EUP).
            mu = jnp.mean(z, axis=-1, keepdims=True)
            msq = jnp.mean(z * z, axis=-1, keepdims=True)
            var = msq - mu * mu
            ln = (z - mu) * lax.rsqrt(var + 1e-6) * g_ref[s] + be_ref[s]

            # pointwise (1x1) conv + residual; MXU operands in wp dtype,
            # f32 accumulation; residual stays f32.
            wp = wp_ref[s]
            h = (jnp.dot(ln.astype(wp.dtype), wp,
                         preferred_element_type=jnp.float32)
                 + bp_ref[s] + a)

            # fused stridec_conv(k5,s2,p2) + c1(k3,s2,p1), SUBSAMPLED BEFORE
            # the matmul: stage h into the zero-padded scratch once, then the
            # five even-row taps h[2m+d-2] (d=0..4) come back as sublane-
            # strided reads and feed five accumulated (N/2,C)x(C,C) MXU dots.
            # Zero padding rows replace the 4 boundary where-selects; the
            # (N,5C) concat buffer and the dense full-N output are gone.
            scr[_PAD:_PAD + N, :] = h
            scr[_PAD + N:_PAD + N + _PAD, :] = jnp.zeros((_PAD, C),
                                                         jnp.float32)
            N2 = N // 2
            g = bc_ref[s]                                 # (1, C) f32 bias
            for d in range(5):
                wcd = wc_ref[s, d]                        # (C, C)
                tap = scr[pl.ds(d, N2, stride=2), :].astype(wcd.dtype)
                g = g + jnp.dot(tap, wcd,
                                preferred_element_type=jnp.float32)
            return g                                      # (N//2, C) f32

        a = x_ref[0].astype(jnp.float32)   # (L, C); HBM I/O may be bf16
        for s in range(n_stages):          # L -> L/2 -> L/4 -> L/8, in VMEM
            a = stage(a, s)
        out_ref[0] = a.astype(out_ref.dtype)

    return kernel


def dyconv_pallas(x_blc, params):
    """x_blc: (B, L, C) -> (B, L//8, C), same dtype (all 3 DownSample stages)."""
    B, L, C = x_blc.shape
    assert L % 8 == 0, "sequence length must be divisible by 8"
    L8 = L // 8
    n_stages = params["dw"].shape[0]

    def full_spec(shape):
        n = len(shape)
        return pl.BlockSpec(shape, lambda b, _n=n: (0,) * _n)

    # Explicit VMEM budget: double-buffered x / out blocks + h staging
    # scratch + (double-buffered) weight stack + live f32 intermediates.
    xb = x_blc.dtype.itemsize
    weight_bytes = sum(int(np.prod(v.shape)) * v.dtype.itemsize
                       for v in params.values())
    est = (2 * L * C * xb                 # input block, double-buffered
           + 2 * L8 * C * xb              # output block, double-buffered
           + (L + 2 * _PAD) * C * 4       # h staging scratch
           + 2 * weight_bytes             # weights (block-invariant, 2-buf)
           + 8 * L * C * 4)               # live f32 intermediates / spill
    vmem_limit = int(min(128 * 2 ** 20, max(32 * 2 ** 20, 2 * est)))

    return pl.pallas_call(
        _make_dyconv_kernel(n_stages),
        out_shape=jax.ShapeDtypeStruct((B, L8, C), x_blc.dtype),
        grid_spec=pltpu.PrefetchScalarGridSpec(
            num_scalar_prefetch=0,
            grid=(B,),
            in_specs=[
                pl.BlockSpec((1, L, C), lambda b: (b, 0, 0)),   # x
                full_spec(params["dw"].shape),                  # (3, 3, C)
                full_spec(params["dwd"].shape),                 # (3, 3, C)
                full_spec(params["gamma"].shape),               # (3, 1, C)
                full_spec(params["beta"].shape),                # (3, 1, C)
                full_spec(params["wp"].shape),                  # (3, C, C)
                full_spec(params["bp"].shape),                  # (3, 1, C)
                full_spec(params["wc"].shape),                  # (3, 5, C, C)
                full_spec(params["bc"].shape),                  # (3, 1, C)
            ],
            out_specs=pl.BlockSpec((1, L8, C), lambda b: (b, 0, 0)),
            scratch_shapes=[pltpu.VMEM((L + 2 * _PAD, C), jnp.float32)],
        ),
        compiler_params=pltpu.CompilerParams(
            dimension_semantics=("parallel",),
            vmem_limit_bytes=vmem_limit),
    )(x_blc, params["dw"], params["dwd"], params["gamma"], params["beta"],
      params["wp"], params["bp"], params["wc"], params["bc"])


# ----------------------------------------------------------------------------
# DyConv forward
# ----------------------------------------------------------------------------
def dyconv_forward_nlc(x_nlc, token_k, params, model_max_len):
    """NLC-native path (no transposes): x_nlc (B, L, C) -> (B, L//8, C)."""
    y = dyconv_pallas(x_nlc, params)

    # Index / length bookkeeping in plain JAX (a pallas_call launch would
    # cost more than this broadcast-compare).
    L = token_k.shape[1]
    pos = jnp.arange(L, dtype=jnp.int32)
    last_nz = jnp.max(jnp.where(token_k != 0, pos[None, :], -1), axis=1)
    true_l = (last_nz + 1) // 8
    # TODO(synk): torch builds a ragged int64 mask when true_l > model_max_len;
    # shapes here are static so we clamp to model_max_len and emit int32.
    true_l = jnp.where(true_l <= model_max_len,
                       jnp.minimum(true_l + 25, model_max_len),
                       true_l).astype(jnp.int32)
    mask = (jnp.arange(model_max_len, dtype=jnp.int32)[None, :]
            < true_l[:, None]).astype(jnp.int32)
    return y, mask


def dyconv_forward(x_bcl, token_k, params, model_max_len):
    """PyTorch-parity NCL path: x_bcl (B, C, L) -> ((B, C, L//8), mask).

    The two transposes are a pure layout tax; prefer dyconv_forward_nlc if
    the surrounding model keeps NLC activations.
    """
    x = jnp.transpose(x_bcl, (0, 2, 1))                 # (B, L, C)
    y, mask = dyconv_forward_nlc(x, token_k, params, model_max_len)
    return jnp.transpose(y, (0, 2, 1)), mask            # (B, C, L//8)


# ----------------------------------------------------------------------------
# Parameters: deterministic PyTorch-layout init + kernel-layout preparation
# ----------------------------------------------------------------------------
def init_downsample_params(key, C):
    ks = jax.random.split(key, 8)

    def u(k, shape, fan_in):
        bound = 1.0 / float(np.sqrt(fan_in))
        return jax.random.uniform(k, shape, jnp.float32, -bound, bound)

    return dict(
        dw_t=u(ks[0], (C, 1, 3), 3),
        dwd_t=u(ks[1], (C, 1, 3), 3),
        gamma_t=jnp.ones((C,), jnp.float32),
        beta_t=jnp.zeros((C,), jnp.float32),
        point_t=u(ks[2], (C, C, 1), C),
        bp_t=u(ks[3], (C,), C),
        w1_t=u(ks[4], (C, C, 5), C * 5),
        b1_t=u(ks[5], (C,), C * 5),
        w2_t=u(ks[6], (C, C, 3), C * 3),
        b2_t=u(ks[7], (C,), C * 3),
    )


def prepare_params(torch_params, mxu_dtype=jnp.bfloat16):
    """Torch-layout per-stage weights -> stacked kernel-layout arrays.

    The two stride-2 output convs (k=5,p=2 and k=3,p=1) share tap positions,
    so their weights are folded into one (5, C, C) per-tap weight stack plus
    a single bias.  Only MXU-operand weights are cast to `mxu_dtype`
    (bf16 by default on every generation — v5e's MXU is natively bf16);
    everything touched by the VPU stays f32.
    """
    per_stage = []
    for tw in torch_params:
        w1k = jnp.transpose(tw["w1_t"], (2, 1, 0))     # (5, C_in, C_out)
        w2k = jnp.transpose(tw["w2_t"], (2, 1, 0))     # (3, C_in, C_out)
        wc = w1k.at[1:4].add(w2k)                      # fold c1 into mid taps
        per_stage.append(dict(
            dw=jnp.transpose(tw["dw_t"][:, 0, :], (1, 0)),     # (3, C)
            dwd=jnp.transpose(tw["dwd_t"][:, 0, :], (1, 0)),   # (3, C)
            gamma=tw["gamma_t"][None, :],
            beta=tw["beta_t"][None, :],
            wp=jnp.transpose(tw["point_t"][:, :, 0], (1, 0)).astype(mxu_dtype),
            bp=tw["bp_t"][None, :],
            wc=wc.astype(mxu_dtype),                            # (5, C, C)
            bc=(tw["b1_t"] + tw["b2_t"])[None, :],
        ))
    return {k: jnp.stack([p[k] for p in per_stage]) for k in per_stage[0]}


# ----------------------------------------------------------------------------
# Pure-JAX reference (NCL layout, mirrors the PyTorch module)
# ----------------------------------------------------------------------------
def downsample_ref(x, w, C):
    dn = ("NCH", "OIH", "NCH")
    hi = lax.Precision.HIGHEST
    dw = lax.conv_general_dilated(x, w["dw_t"], (1,), [(1, 1)],
                                  dimension_numbers=dn, feature_group_count=C,
                                  precision=hi)
    dwd = lax.conv_general_dilated(dw, w["dwd_t"], (1,), [(3, 3)],
                                   rhs_dilation=(3,), dimension_numbers=dn,
                                   feature_group_count=C, precision=hi)
    z = jnp.transpose(dwd, (0, 2, 1))
    mu = z.mean(-1, keepdims=True)
    var = ((z - mu) ** 2).mean(-1, keepdims=True)
    ln = (z - mu) / jnp.sqrt(var + 1e-6) * w["gamma_t"] + w["beta_t"]
    ln = jnp.transpose(ln, (0, 2, 1))
    h = (lax.conv_general_dilated(ln, w["point_t"], (1,), [(0, 0)],
                                  dimension_numbers=dn, precision=hi)
         + w["bp_t"][None, :, None] + x)
    o1 = (lax.conv_general_dilated(h, w["w1_t"], (2,), [(2, 2)],
                                   dimension_numbers=dn, precision=hi)
          + w["b1_t"][None, :, None])
    o2 = (lax.conv_general_dilated(h, w["w2_t"], (2,), [(1, 1)],
                                   dimension_numbers=dn, precision=hi)
          + w["b2_t"][None, :, None])
    return o1 + o2


if __name__ == "__main__":
    B, C, L = 2, 32, 64          # dim=32 (production C should be a multiple of 128)
    model_max_len = 32

    key = jax.random.PRNGKey(0)
    kx, kp1, kp2, kp3 = jax.random.split(key, 4)
    x = jax.random.normal(kx, (B, C, L), jnp.float32)

    token_k = jnp.zeros((B, L), jnp.int32)
    token_k = token_k.at[0, :60].set(1)     # last nonzero at 59
    token_k = token_k.at[1, :21].set(1)     # last nonzero at 20

    torch_params = [init_downsample_params(k, C) for k in (kp1, kp2, kp3)]

    fwd = jax.jit(dyconv_forward, static_argnums=(3,))

    # reference (matches the PyTorch module op-by-op)
    ref = x
    for tw in torch_params:
        ref = downsample_ref(ref, tw, C)

    # --- f32 MXU/IO path: tight numerical check of the fused kernel ---
    params_f32 = prepare_params(torch_params, mxu_dtype=jnp.float32)
    out_f32, mask = fwd(x, token_k, params_f32, model_max_len)
    out_f32 = jax.block_until_ready(out_f32)
    mask = jax.block_until_ready(mask)
    assert out_f32.shape == (B, C, L // 8), out_f32.shape
    np.testing.assert_allclose(np.asarray(out_f32), np.asarray(ref),
                               rtol=2e-3, atol=2e-3)

    # --- fast path: bf16 HBM I/O + bf16 MXU operands (all generations) ---
    params_bf16 = prepare_params(torch_params, mxu_dtype=jnp.bfloat16)
    out_bf16, _ = fwd(x.astype(jnp.bfloat16), token_k, params_bf16,
                      model_max_len)
    out_bf16 = jax.block_until_ready(out_bf16)
    np.testing.assert_allclose(np.asarray(out_bf16.astype(jnp.float32)),
                               np.asarray(ref), rtol=1e-1, atol=1e-1)

    # --- mask check ---
    tk_np = np.asarray(token_k)
    ref_rows = []
    for i in range(B):
        cur = int(np.nonzero(tk_np[i])[0][-1])
        tl = (cur + 1) // 8
        if tl <= model_max_len:
            tl = min(tl + 25, model_max_len)
        ref_rows.append(np.concatenate(
            [np.ones(tl, np.int32), np.zeros(model_max_len - tl, np.int32)]))
    np.testing.assert_array_equal(np.asarray(mask), np.stack(ref_rows))

    print("KERNEL_OK")
</pallas_src>

<mosaic_0001>
module attributes {stable_mosaic.version = 11 : i64} {
  func.func @kernel(%arg0: i32, %arg1: memref<1x64x32xf32, #tpu.memory_space<vmem>>, %arg2: memref<3x3x32xf32, #tpu.memory_space<vmem>>, %arg3: memref<3x3x32xf32, #tpu.memory_space<vmem>>, %arg4: memref<3x1x32xf32, #tpu.memory_space<vmem>>, %arg5: memref<3x1x32xf32, #tpu.memory_space<vmem>>, %arg6: memref<3x32x32xf32, #tpu.memory_space<vmem>>, %arg7: memref<3x1x32xf32, #tpu.memory_space<vmem>>, %arg8: memref<3x5x32x32xf32, #tpu.memory_space<vmem>>, %arg9: memref<3x1x32xf32, #tpu.memory_space<vmem>>, %arg10: memref<1x8x32xf32, #tpu.memory_space<vmem>>, %arg11: memref<68x32xf32, #tpu.memory_space<vmem>>) attributes {dimension_semantics = [#tpu.dimension_semantics<parallel>], iteration_bounds = array<i64: 2>, scalar_prefetch = 0 : i64, scratch_operands = 1 : i64, tpu.core_type = #tpu.core_type<tc>, window_params = [{transform_indices = @transform_0, window_bounds = array<i64: 1, 64, 32>}, {pipeline_mode = #tpu.pipeline_mode<synchronous>, transform_indices = @transform_1, window_bounds = array<i64: 3, 3, 32>}, {pipeline_mode = #tpu.pipeline_mode<synchronous>, transform_indices = @transform_2, window_bounds = array<i64: 3, 3, 32>}, {pipeline_mode = #tpu.pipeline_mode<synchronous>, transform_indices = @transform_3, window_bounds = array<i64: 3, 1, 32>}, {pipeline_mode = #tpu.pipeline_mode<synchronous>, transform_indices = @transform_4, window_bounds = array<i64: 3, 1, 32>}, {pipeline_mode = #tpu.pipeline_mode<synchronous>, transform_indices = @transform_5, window_bounds = array<i64: 3, 32, 32>}, {pipeline_mode = #tpu.pipeline_mode<synchronous>, transform_indices = @transform_6, window_bounds = array<i64: 3, 1, 32>}, {pipeline_mode = #tpu.pipeline_mode<synchronous>, transform_indices = @transform_7, window_bounds = array<i64: 3, 5, 32, 32>}, {pipeline_mode = #tpu.pipeline_mode<synchronous>, transform_indices = @transform_8, window_bounds = array<i64: 3, 1, 32>}, {transform_indices = @transform_9, window_bounds = array<i64: 1, 8, 32>}]} {
    %cst = arith.constant 0.000000e+00 : f32
    %0 = vector.broadcast %cst : f32 to vector<2x32xf32>
    %c0 = arith.constant 0 : index
    %c0_0 = arith.constant 0 : index
    %1 = vector.load %arg11[%c0, %c0_0] : memref<68x32xf32, #tpu.memory_space<vmem>>, vector<2x32xf32>
    tpu.vector_store %arg11[%c0, %c0_0], %0 {strides = array<i32>} : memref<68x32xf32, #tpu.memory_space<vmem>>, vector<2x32xf32>,
    %c0_1 = arith.constant 0 : index
    %c0_2 = arith.constant 0 : index
    %c0_3 = arith.constant 0 : index
    %2 = vector.load %arg1[%c0_1, %c0_2, %c0_3] : memref<1x64x32xf32, #tpu.memory_space<vmem>>, vector<1x64x32xf32>
    %3 = vector.shape_cast %2 : vector<1x64x32xf32> to vector<64x32xf32>
    %4 = tpu.iota {dimensions = array<i32: 0>} : vector<64x1xi32>
    %c0_4 = arith.constant 0 : index
    %c0_5 = arith.constant 0 : index
    %c0_6 = arith.constant 0 : index
    %5 = vector.load %arg2[%c0_4, %c0_5, %c0_6] : memref<3x3x32xf32, #tpu.memory_space<vmem>>, vector<1x3x32xf32>
    %6 = vector.shape_cast %5 : vector<1x3x32xf32> to vector<3x32xf32>
    %c1_i32 = arith.constant 1 : i32
    %7 = vector.broadcast %c1_i32 : i32 to vector<64x1xi32>
    %8 = arith.cmpi sge, %4, %7 : vector<64x1xi32>
    %c1_i32_7 = arith.constant 1 : i32
    %9 = tpu.dynamic_rotate %3 by %c1_i32_7 dim 0 : vector<64x32xf32>, i32 -> vector<64x32xf32>
    %cst_8 = arith.constant 0.000000e+00 : f32
    %10 = vector.shape_cast %8 : vector<64x1xi1> to vector<64x1xi1>
    %11 = vector.broadcast %10 : vector<64x1xi1> to vector<64x32xi1>
    %12 = vector.broadcast %cst_8 : f32 to vector<64x32xf32>
    %13 = arith.select %11, %9, %12 : vector<64x32xi1>, vector<64x32xf32>
    %14 = vector.extract_strided_slice %6 {offsets = [0, 0], sizes = [1, 32], strides = [1, 1]} : vector<3x32xf32> to vector<1x32xf32>
    %15 = vector.broadcast %14 : vector<1x32xf32> to vector<64x32xf32>
    %16 = arith.mulf %13, %15 : vector<64x32xf32>
    %17 = vector.extract_strided_slice %6 {offsets = [1, 0], sizes = [1, 32], strides = [1, 1]} : vector<3x32xf32> to vector<1x32xf32>
    %18 = vector.broadcast %17 : vector<1x32xf32> to vector<64x32xf32>
    %19 = arith.mulf %3, %18 : vector<64x32xf32>
    %20 = arith.addf %16, %19 : vector<64x32xf32>
    %c63_i32 = arith.constant 63 : i32
    %21 = vector.broadcast %c63_i32 : i32 to vector<64x1xi32>
    %22 = arith.cmpi slt, %4, %21 : vector<64x1xi32>
    %c63_i32_9 = arith.constant 63 : i32
    %23 = tpu.dynamic_rotate %3 by %c63_i32_9 dim 0 : vector<64x32xf32>, i32 -> vector<64x32xf32>
    %cst_10 = arith.constant 0.000000e+00 : f32
    %24 = vector.shape_cast %22 : vector<64x1xi1> to vector<64x1xi1>
    %25 = vector.broadcast %24 : vector<64x1xi1> to vector<64x32xi1>
    %26 = vector.broadcast %cst_10 : f32 to vector<64x32xf32>
    %27 = arith.select %25, %23, %26 : vector<64x32xi1>, vector<64x32xf32>
    %28 = vector.extract_strided_slice %6 {offsets = [2, 0], sizes = [1, 32], strides = [1, 1]} : vector<3x32xf32> to vector<1x32xf32>
    %29 = vector.broadcast %28 : vector<1x32xf32> to vector<64x32xf32>
    %30 = arith.mulf %27, %29 : vector<64x32xf32>
    %31 = arith.addf %20, %30 : vector<64x32xf32>
    %c0_11 = arith.constant 0 : index
    %c0_12 = arith.constant 0 : index
    %c0_13 = arith.constant 0 : index
    %32 = vector.load %arg3[%c0_11, %c0_12, %c0_13] : memref<3x3x32xf32, #tpu.memory_space<vmem>>, vector<1x3x32xf32>
    %33 = vector.shape_cast %32 : vector<1x3x32xf32> to vector<3x32xf32>
    %c3_i32 = arith.constant 3 : i32
    %34 = vector.broadcast %c3_i32 : i32 to vector<64x1xi32>
    %35 = arith.cmpi sge, %4, %34 : vector<64x1xi32>
    %c3_i32_14 = arith.constant 3 : i32
    %36 = tpu.dynamic_rotate %31 by %c3_i32_14 dim 0 : vector<64x32xf32>, i32 -> vector<64x32xf32>
    %cst_15 = arith.constant 0.000000e+00 : f32
    %37 = vector.shape_cast %35 : vector<64x1xi1> to vector<64x1xi1>
    %38 = vector.broadcast %37 : vector<64x1xi1> to vector<64x32xi1>
    %39 = vector.broadcast %cst_15 : f32 to vector<64x32xf32>
    %40 = arith.select %38, %36, %39 : vector<64x32xi1>, vector<64x32xf32>
    %41 = vector.extract_strided_slice %33 {offsets = [0, 0], sizes = [1, 32], strides = [1, 1]} : vector<3x32xf32> to vector<1x32xf32>
    %42 = vector.broadcast %41 : vector<1x32xf32> to vector<64x32xf32>
    %43 = arith.mulf %40, %42 : vector<64x32xf32>
    %44 = vector.extract_strided_slice %33 {offsets = [1, 0], sizes = [1, 32], strides = [1, 1]} : vector<3x32xf32> to vector<1x32xf32>
    %45 = vector.broadcast %44 : vector<1x32xf32> to vector<64x32xf32>
    %46 = arith.mulf %31, %45 : vector<64x32xf32>
    %47 = arith.addf %43, %46 : vector<64x32xf32>
    %c61_i32 = arith.constant 61 : i32
    %48 = vector.broadcast %c61_i32 : i32 to vector<64x1xi32>
    %49 = arith.cmpi slt, %4, %48 : vector<64x1xi32>
    %c61_i32_16 = arith.constant 61 : i32
    %50 = tpu.dynamic_rotate %31 by %c61_i32_16 dim 0 : vector<64x32xf32>, i32 -> vector<64x32xf32>
    %cst_17 = arith.constant 0.000000e+00 : f32
    %51 = vector.shape_cast %49 : vector<64x1xi1> to vector<64x1xi1>
    %52 = vector.broadcast %51 : vector<64x1xi1> to vector<64x32xi1>
    %53 = vector.broadcast %cst_17 : f32 to vector<64x32xf32>
    %54 = arith.select %52, %50, %53 : vector<64x32xi1>, vector<64x32xf32>
    %55 = vector.extract_strided_slice %33 {offsets = [2, 0], sizes = [1, 32], strides = [1, 1]} : vector<3x32xf32> to vector<1x32xf32>
    %56 = vector.broadcast %55 : vector<1x32xf32> to vector<64x32xf32>
    %57 = arith.mulf %54, %56 : vector<64x32xf32>
    %58 = arith.addf %47, %57 : vector<64x32xf32>
    %cst_18 = arith.constant dense<0.000000e+00> : vector<64xf32>
    %59 = vector.multi_reduction <add>, %58, %cst_18 [1] : vector<64x32xf32> to vector<64xf32>
    %60 = vector.shape_cast %59 : vector<64xf32> to vector<64x1xf32>
    %cst_19 = arith.constant 3.200000e+01 : f32
    %61 = vector.broadcast %cst_19 : f32 to vector<64x1xf32>
    %62 = arith.divf %60, %61 : vector<64x1xf32>
    %63 = arith.mulf %58, %58 : vector<64x32xf32>
    %cst_20 = arith.constant dense<0.000000e+00> : vector<64xf32>
    %64 = vector.multi_reduction <add>, %63, %cst_20 [1] : vector<64x32xf32> to vector<64xf32>
    %65 = vector.shape_cast %64 : vector<64xf32> to vector<64x1xf32>
    %cst_21 = arith.constant 3.200000e+01 : f32
    %66 = vector.broadcast %cst_21 : f32 to vector<64x1xf32>
    %67 = arith.divf %65, %66 : vector<64x1xf32>
    %68 = arith.mulf %62, %62 : vector<64x1xf32>
    %69 = arith.subf %67, %68 : vector<64x1xf32>
    %70 = vector.broadcast %62 : vector<64x1xf32> to vector<64x32xf32>
    %71 = arith.subf %58, %70 : vector<64x32xf32>
    %cst_22 = arith.constant 9.99999997E-7 : f32
    %72 = vector.broadcast %cst_22 : f32 to vector<64x1xf32>
    %73 = arith.addf %69, %72 : vector<64x1xf32>
    %74 = math.rsqrt %73 : vector<64x1xf32>
    %75 = vector.broadcast %74 : vector<64x1xf32> to vector<64x32xf32>
    %76 = arith.mulf %71, %75 : vector<64x32xf32>
    %c0_23 = arith.constant 0 : index
    %c0_24 = arith.constant 0 : index
    %c0_25 = arith.constant 0 : index
    %77 = vector.load %arg4[%c0_23, %c0_24, %c0_25] : memref<3x1x32xf32, #tpu.memory_space<vmem>>, vector<1x1x32xf32>
    %78 = vector.shape_cast %77 : vector<1x1x32xf32> to vector<1x32xf32>
    %79 = vector.broadcast %78 : vector<1x32xf32> to vector<64x32xf32>
    %80 = arith.mulf %76, %79 : vector<64x32xf32>
    %c0_26 = arith.constant 0 : index
    %c0_27 = arith.constant 0 : index
    %c0_28 = arith.constant 0 : index
    %81 = vector.load %arg5[%c0_26, %c0_27, %c0_28] : memref<3x1x32xf32, #tpu.memory_space<vmem>>, vector<1x1x32xf32>
    %82 = vector.shape_cast %81 : vector<1x1x32xf32> to vector<1x32xf32>
    %83 = vector.broadcast %82 : vector<1x32xf32> to vector<64x32xf32>
    %84 = arith.addf %80, %83 : vector<64x32xf32>
    %c0_29 = arith.constant 0 : index
    %c0_30 = arith.constant 0 : index
    %c0_31 = arith.constant 0 : index
    %85 = vector.load %arg6[%c0_29, %c0_30, %c0_31] : memref<3x32x32xf32, #tpu.memory_space<vmem>>, vector<1x32x32xf32>
    %86 = vector.shape_cast %85 : vector<1x32x32xf32> to vector<32x32xf32>
    %cst_32 = arith.constant dense<0.000000e+00> : vector<64x32xf32>
    %87 = tpu.matmul %84, %86, %cst_32 {dimension_numbers = #tpu.dot_dimension_numbers<[1], [0], [0], [1], [0, 0, 1, 1], [], []>} : vector<64x32xf32>, vector<32x32xf32>, vector<64x32xf32> -> vector<64x32xf32>
    %c0_33 = arith.constant 0 : index
    %c0_34 = arith.constant 0 : index
    %c0_35 = arith.constant 0 : index
    %88 = vector.load %arg7[%c0_33, %c0_34, %c0_35] : memref<3x1x32xf32, #tpu.memory_space<vmem>>, vector<1x1x32xf32>
    %89 = vector.shape_cast %88 : vector<1x1x32xf32> to vector<1x32xf32>
    %90 = vector.broadcast %89 : vector<1x32xf32> to vector<64x32xf32>
    %91 = arith.addf %87, %90 : vector<64x32xf32>
    %92 = arith.addf %91, %3 : vector<64x32xf32>
    %c2 = arith.constant 2 : index
    %c0_36 = arith.constant 0 : index
    %93 = vector.load %arg11[%c2, %c0_36] : memref<68x32xf32, #tpu.memory_space<vmem>>, vector<64x32xf32>
    tpu.vector_store %arg11[%c2, %c0_36], %92 {strides = array<i32>} : memref<68x32xf32, #tpu.memory_space<vmem>>, vector<64x32xf32>,
    %cst_37 = arith.constant 0.000000e+00 : f32
    %94 = vector.broadcast %cst_37 : f32 to vector<2x32xf32>
    %c66 = arith.constant 66 : index
    %c0_38 = arith.constant 0 : index
    %95 = vector.load %arg11[%c66, %c0_38] : memref<68x32xf32, #tpu.memory_space<vmem>>, vector<2x32xf32>
    tpu.vector_store %arg11[%c66, %c0_38], %94 {strides = array<i32>} : memref<68x32xf32, #tpu.memory_space<vmem>>, vector<2x32xf32>,
    %c0_39 = arith.constant 0 : index
    %c0_40 = arith.constant 0 : index
    %c0_41 = arith.constant 0 : index
    %96 = vector.load %arg9[%c0_39, %c0_40, %c0_41] : memref<3x1x32xf32, #tpu.memory_space<vmem>>, vector<1x1x32xf32>
    %97 = vector.shape_cast %96 : vector<1x1x32xf32> to vector<1x32xf32>
    %c0_42 = arith.constant 0 : index
    %c0_43 = arith.constant 0 : index
    %c0_44 = arith.constant 0 : index
    %c0_45 = arith.constant 0 : index
    %98 = vector.load %arg8[%c0_42, %c0_43, %c0_44, %c0_45] : memref<3x5x32x32xf32, #tpu.memory_space<vmem>>, vector<1x1x32x32xf32>
    %99 = vector.shape_cast %98 : vector<1x1x32x32xf32> to vector<32x32xf32>
    %c0_46 = arith.constant 0 : index
    %c0_47 = arith.constant 0 : index
    %100 = tpu.strided_load %arg11[%c0_46, %c0_47] {strides = array<i32: 2, 1>} : memref<68x32xf32, #tpu.memory_space<vmem>>, vector<32x32xf32>
    %cst_48 = arith.constant dense<0.000000e+00> : vector<32x32xf32>
    %101 = tpu.matmul %100, %99, %cst_48 {dimension_numbers = #tpu.dot_dimension_numbers<[1], [0], [0], [1], [0, 0, 1, 1], [], []>} : vector<32x32xf32>, vector<32x32xf32>, vector<32x32xf32> -> vector<32x32xf32>
    %102 = vector.broadcast %97 : vector<1x32xf32> to vector<32x32xf32>
    %103 = arith.addf %102, %101 : vector<32x32xf32>
    %c0_49 = arith.constant 0 : index
    %c1 = arith.constant 1 : index
    %c0_50 = arith.constant 0 : index
    %c0_51 = arith.constant 0 : index
    %104 = vector.load %arg8[%c0_49, %c1, %c0_50, %c0_51] : memref<3x5x32x32xf32, #tpu.memory_space<vmem>>, vector<1x1x32x32xf32>
    %105 = vector.shape_cast %104 : vector<1x1x32x32xf32> to vector<32x32xf32>
    %c1_52 = arith.constant 1 : index
    %c0_53 = arith.constant 0 : index
    %106 = tpu.strided_load %arg11[%c1_52, %c0_53] {strides = array<i32: 2, 1>} : memref<68x32xf32, #tpu.memory_space<vmem>>, vector<32x32xf32>
    %cst_54 = arith.constant dense<0.000000e+00> : vector<32x32xf32>
    %107 = tpu.matmul %106, %105, %cst_54 {dimension_numbers = #tpu.dot_dimension_numbers<[1], [0], [0], [1], [0, 0, 1, 1], [], []>} : vector<32x32xf32>, vector<32x32xf32>, vector<32x32xf32> -> vector<32x32xf32>
    %108 = arith.addf %103, %107 : vector<32x32xf32>
    %c0_55 = arith.constant 0 : index
    %c2_56 = arith.constant 2 : index
    %c0_57 = arith.constant 0 : index
    %c0_58 = arith.constant 0 : index
    %109 = vector.load %arg8[%c0_55, %c2_56, %c0_57, %c0_58] : memref<3x5x32x32xf32, #tpu.memory_space<vmem>>, vector<1x1x32x32xf32>
    %110 = vector.shape_cast %109 : vector<1x1x32x32xf32> to vector<32x32xf32>
    %c2_59 = arith.constant 2 : index
    %c0_60 = arith.constant 0 : index
    %111 = tpu.strided_load %arg11[%c2_59, %c0_60] {strides = array<i32: 2, 1>} : memref<68x32xf32, #tpu.memory_space<vmem>>, vector<32x32xf32>
    %cst_61 = arith.constant dense<0.000000e+00> : vector<32x32xf32>
    %112 = tpu.matmul %111, %110, %cst_61 {dimension_numbers = #tpu.dot_dimension_numbers<[1], [0], [0], [1], [0, 0, 1, 1], [], []>} : vector<32x32xf32>, vector<32x32xf32>, vector<32x32xf32> -> vector<32x32xf32>
    %113 = arith.addf %108, %112 : vector<32x32xf32>
    %c0_62 = arith.constant 0 : index
    %c3 = arith.constant 3 : index
    %c0_63 = arith.constant 0 : index
    %c0_64 = arith.constant 0 : index
    %114 = vector.load %arg8[%c0_62, %c3, %c0_63, %c0_64] : memref<3x5x32x32xf32, #tpu.memory_space<vmem>>, vector<1x1x32x32xf32>
    %115 = vector.shape_cast %114 : vector<1x1x32x32xf32> to vector<32x32xf32>
    %c3_65 = arith.constant 3 : index
    %c0_66 = arith.constant 0 : index
    %116 = tpu.strided_load %arg11[%c3_65, %c0_66] {strides = array<i32: 2, 1>} : memref<68x32xf32, #tpu.memory_space<vmem>>, vector<32x32xf32>
    %cst_67 = arith.constant dense<0.000000e+00> : vector<32x32xf32>
    %117 = tpu.matmul %116, %115, %cst_67 {dimension_numbers = #tpu.dot_dimension_numbers<[1], [0], [0], [1], [0, 0, 1, 1], [], []>} : vector<32x32xf32>, vector<32x32xf32>, vector<32x32xf32> -> vector<32x32xf32>
    %118 = arith.addf %113, %117 : vector<32x32xf32>
    %c0_68 = arith.constant 0 : index
    %c4 = arith.constant 4 : index
    %c0_69 = arith.constant 0 : index
    %c0_70 = arith.constant 0 : index
    %119 = vector.load %arg8[%c0_68, %c4, %c0_69, %c0_70] : memref<3x5x32x32xf32, #tpu.memory_space<vmem>>, vector<1x1x32x32xf32>
    %120 = vector.shape_cast %119 : vector<1x1x32x32xf32> to vector<32x32xf32>
    %c4_71 = arith.constant 4 : index
    %c0_72 = arith.constant 0 : index
    %121 = tpu.strided_load %arg11[%c4_71, %c0_72] {strides = array<i32: 2, 1>} : memref<68x32xf32, #tpu.memory_space<vmem>>, vector<32x32xf32>
    %cst_73 = arith.constant dense<0.000000e+00> : vector<32x32xf32>
    %122 = tpu.matmul %121, %120, %cst_73 {dimension_numbers = #tpu.dot_dimension_numbers<[1], [0], [0], [1], [0, 0, 1, 1], [], []>} : vector<32x32xf32>, vector<32x32xf32>, vector<32x32xf32> -> vector<32x32xf32>
    %123 = arith.addf %118, %122 : vector<32x32xf32>
    %124 = tpu.iota {dimensions = array<i32: 0>} : vector<32x1xi32>
    %c1_74 = arith.constant 1 : index
    %c0_75 = arith.constant 0 : index
    %c0_76 = arith.constant 0 : index
    %125 = vector.load %arg2[%c1_74, %c0_75, %c0_76] : memref<3x3x32xf32, #tpu.memory_space<vmem>>, vector<1x3x32xf32>
    %126 = vector.shape_cast %125 : vector<1x3x32xf32> to vector<3x32xf32>
    %c1_i32_77 = arith.constant 1 : i32
    %127 = vector.broadcast %c1_i32_77 : i32 to vector<32x1xi32>
    %128 = arith.cmpi sge, %124, %127 : vector<32x1xi32>
    %c1_i32_78 = arith.constant 1 : i32
    %129 = tpu.dynamic_rotate %123 by %c1_i32_78 dim 0 : vector<32x32xf32>, i32 -> vector<32x32xf32>
    %cst_79 = arith.constant 0.000000e+00 : f32
    %130 = vector.shape_cast %128 : vector<32x1xi1> to vector<32x1xi1>
    %131 = vector.broadcast %130 : vector<32x1xi1> to vector<32x32xi1>
    %132 = vector.broadcast %cst_79 : f32 to vector<32x32xf32>
    %133 = arith.select %131, %129, %132 : vector<32x32xi1>, vector<32x32xf32>
    %134 = vector.extract_strided_slice %126 {offsets = [0, 0], sizes = [1, 32], strides = [1, 1]} : vector<3x32xf32> to vector<1x32xf32>
    %135 = vector.broadcast %134 : vector<1x32xf32> to vector<32x32xf32>
    %136 = arith.mulf %133, %135 : vector<32x32xf32>
    %137 = vector.extract_strided_slice %126 {offsets = [1, 0], sizes = [1, 32], strides = [1, 1]} : vector<3x32xf32> to vector<1x32xf32>
    %138 = vector.broadcast %137 : vector<1x32xf32> to vector<32x32xf32>
    %139 = arith.mulf %123, %138 : vector<32x32xf32>
    %140 = arith.addf %136, %139 : vector<32x32xf32>
    %c31_i32 = arith.constant 31 : i32
    %141 = vector.broadcast %c31_i32 : i32 to vector<32x1xi32>
    %142 = arith.cmpi slt, %124, %141 : vector<32x1xi32>
    %c31_i32_80 = arith.constant 31 : i32
    %143 = tpu.dynamic_rotate %123 by %c31_i32_80 dim 0 : vector<32x32xf32>, i32 -> vector<32x32xf32>
    %cst_81 = arith.constant 0.000000e+00 : f32
    %144 = vector.shape_cast %142 : vector<32x1xi1> to vector<32x1xi1>
    %145 = vector.broadcast %144 : vector<32x1xi1> to vector<32x32xi1>
    %146 = vector.broadcast %cst_81 : f32 to vector<32x32xf32>
    %147 = arith.select %145, %143, %146 : vector<32x32xi1>, vector<32x32xf32>
    %148 = vector.extract_strided_slice %126 {offsets = [2, 0], sizes = [1, 32], strides = [1, 1]} : vector<3x32xf32> to vector<1x32xf32>
    %149 = vector.broadcast %148 : vector<1x32xf32> to vector<32x32xf32>
    %150 = arith.mulf %147, %149 : vector<32x32xf32>
    %151 = arith.addf %140, %150 : vector<32x32xf32>
    %c1_82 = arith.constant 1 : index
    %c0_83 = arith.constant 0 : index
    %c0_84 = arith.constant 0 : index
    %152 = vector.load %arg3[%c1_82, %c0_83, %c0_84] : memref<3x3x32xf32, #tpu.memory_space<vmem>>, vector<1x3x32xf32>
    %153 = vector.shape_cast %152 : vector<1x3x32xf32> to vector<3x32xf32>
    %c3_i32_85 = arith.constant 3 : i32
    %154 = vector.broadcast %c3_i32_85 : i32 to vector<32x1xi32>
    %155 = arith.cmpi sge, %124, %154 : vector<32x1xi32>
    %c3_i32_86 = arith.constant 3 : i32
    %156 = tpu.dynamic_rotate %151 by %c3_i32_86 dim 0 : vector<32x32xf32>, i32 -> vector<32x32xf32>
    %cst_87 = arith.constant 0.000000e+00 : f32
    %157 = vector.shape_cast %155 : vector<32x1xi1> to vector<32x1xi1>
    %158 = vector.broadcast %157 : vector<32x1xi1> to vector<32x32xi1>
    %159 = vector.broadcast %cst_87 : f32 to vector<32x32xf32>
    %160 = arith.select %158, %156, %159 : vector<32x32xi1>, vector<32x32xf32>
    %161 = vector.extract_strided_slice %153 {offsets = [0, 0], sizes = [1, 32], strides = [1, 1]} : vector<3x32xf32> to vector<1x32xf32>
    %162 = vector.broadcast %161 : vector<1x32xf32> to vector<32x32xf32>
    %163 = arith.mulf %160, %162 : vector<32x32xf32>
    %164 = vector.extract_strided_slice %153 {offsets = [1, 0], sizes = [1, 32], strides = [1, 1]} : vector<3x32xf32> to vector<1x32xf32>
    %165 = vector.broadcast %164 : vector<1x32xf32> to vector<32x32xf32>
    %166 = arith.mulf %151, %165 : vector<32x32xf32>
    %167 = arith.addf %163, %166 : vector<32x32xf32>
    %c29_i32 = arith.constant 29 : i32
    %168 = vector.broadcast %c29_i32 : i32 to vector<32x1xi32>
    %169 = arith.cmpi slt, %124, %168 : vector<32x1xi32>
    %c29_i32_88 = arith.constant 29 : i32
    %170 = tpu.dynamic_rotate %151 by %c29_i32_88 dim 0 : vector<32x32xf32>, i32 -> vector<32x32xf32>
    %cst_89 = arith.constant 0.000000e+00 : f32
    %171 = vector.shape_cast %169 : vector<32x1xi1> to vector<32x1xi1>
    %172 = vector.broadcast %171 : vector<32x1xi1> to vector<32x32xi1>
    %173 = vector.broadcast %cst_89 : f32 to vector<32x32xf32>
    %174 = arith.select %172, %170, %173 : vector<32x32xi1>, vector<32x32xf32>
    %175 = vector.extract_strided_slice %153 {offsets = [2, 0], sizes = [1, 32], strides = [1, 1]} : vector<3x32xf32> to vector<1x32xf32>
    %176 = vector.broadcast %175 : vector<1x32xf32> to vector<32x32xf32>
    %177 = arith.mulf %174, %176 : vector<32x32xf32>
    %178 = arith.addf %167, %177 : vector<32x32xf32>
    %cst_90 = arith.constant dense<0.000000e+00> : vector<32xf32>
    %179 = vector.multi_reduction <add>, %178, %cst_90 [1] : vector<32x32xf32> to vector<32xf32>
    %180 = vector.shape_cast %179 : vector<32xf32> to vector<32x1xf32>
    %cst_91 = arith.constant 3.200000e+01 : f32
    %181 = vector.broadcast %cst_91 : f32 to vector<32x1xf32>
    %182 = arith.divf %180, %181 : vector<32x1xf32>
    %183 = arith.mulf %178, %178 : vector<32x32xf32>
    %cst_92 = arith.constant dense<0.000000e+00> : vector<32xf32>
    %184 = vector.multi_reduction <add>, %183, %cst_92 [1] : vector<32x32xf32> to vector<32xf32>
    %185 = vector.shape_cast %184 : vector<32xf32> to vector<32x1xf32>
    %cst_93 = arith.constant 3.200000e+01 : f32
    %186 = vector.broadcast %cst_93 : f32 to vector<32x1xf32>
    %187 = arith.divf %185, %186 : vector<32x1xf32>
    %188 = arith.mulf %182, %182 : vector<32x1xf32>
    %189 = arith.subf %187, %188 : vector<32x1xf32>
    %190 = vector.broadcast %182 : vector<32x1xf32> to vector<32x32xf32>
    %191 = arith.subf %178, %190 : vector<32x32xf32>
    %cst_94 = arith.constant 9.99999997E-7 : f32
    %192 = vector.broadcast %cst_94 : f32 to vector<32x1xf32>
    %193 = arith.addf %189, %192 : vector<32x1xf32>
    %194 = math.rsqrt %193 : vector<32x1xf32>
    %195 = vector.broadcast %194 : vector<32x1xf32> to vector<32x32xf32>
    %196 = arith.mulf %191, %195 : vector<32x32xf32>
    %c1_95 = arith.constant 1 : index
    %c0_96 = arith.constant 0 : index
    %c0_97 = arith.constant 0 : index
    %197 = vector.load %arg4[%c1_95, %c0_96, %c0_97] : memref<3x1x32xf32, #tpu.memory_space<vmem>>, vector<1x1x32xf32>
    %198 = vector.shape_cast %197 : vector<1x1x32xf32> to vector<1x32xf32>
    %199 = vector.broadcast %198 : vector<1x32xf32> to vector<32x32xf32>
    %200 = arith.mulf %196, %199 : vector<32x32xf32>
    %c1_98 = arith.constant 1 : index
    %c0_99 = arith.constant 0 : index
    %c0_100 = arith.constant 0 : index
    %201 = vector.load %arg5[%c1_98, %c0_99, %c0_100] : memref<3x1x32xf32, #tpu.memory_space<vmem>>, vector<1x1x32xf32>
    %202 = vector.shape_cast %201 : vector<1x1x32xf32> to vector<1x32xf32>
    %203 = vector.broadcast %202 : vector<1x32xf32> to vector<32x32xf32>
    %204 = arith.addf %200, %203 : vector<32x32xf32>
    %c1_101 = arith.constant 1 : index
    %c0_102 = arith.constant 0 : index
    %c0_103 = arith.constant 0 : index
    %205 = vector.load %arg6[%c1_101, %c0_102, %c0_103] : memref<3x32x32xf32, #tpu.memory_space<vmem>>, vector<1x32x32xf32>
    %206 = vector.shape_cast %205 : vector<1x32x32xf32> to vector<32x32xf32>
    %cst_104 = arith.constant dense<0.000000e+00> : vector<32x32xf32>
    %207 = tpu.matmul %204, %206, %cst_104 {dimension_numbers = #tpu.dot_dimension_numbers<[1], [0], [0], [1], [0, 0, 1, 1], [], []>} : vector<32x32xf32>, vector<32x32xf32>, vector<32x32xf32> -> vector<32x32xf32>
    %c1_105 = arith.constant 1 : index
    %c0_106 = arith.constant 0 : index
    %c0_107 = arith.constant 0 : index
    %208 = vector.load %arg7[%c1_105, %c0_106, %c0_107] : memref<3x1x32xf32, #tpu.memory_space<vmem>>, vector<1x1x32xf32>
    %209 = vector.shape_cast %208 : vector<1x1x32xf32> to vector<1x32xf32>
    %210 = vector.broadcast %209 : vector<1x32xf32> to vector<32x32xf32>
    %211 = arith.addf %207, %210 : vector<32x32xf32>
    %212 = arith.addf %211, %123 : vector<32x32xf32>
    %c2_108 = arith.constant 2 : index
    %c0_109 = arith.constant 0 : index
    %213 = vector.load %arg11[%c2_108, %c0_109] : memref<68x32xf32, #tpu.memory_space<vmem>>, vector<32x32xf32>
    tpu.vector_store %arg11[%c2_108, %c0_109], %212 {strides = array<i32>} : memref<68x32xf32, #tpu.memory_space<vmem>>, vector<32x32xf32>,
    %cst_110 = arith.constant 0.000000e+00 : f32
    %214 = vector.broadcast %cst_110 : f32 to vector<2x32xf32>
    %c34 = arith.constant 34 : index
    %c0_111 = arith.constant 0 : index
    %215 = vector.load %arg11[%c34, %c0_111] : memref<68x32xf32, #tpu.memory_space<vmem>>, vector<2x32xf32>
    tpu.vector_store %arg11[%c34, %c0_111], %214 {strides = array<i32>} : memref<68x32xf32, #tpu.memory_space<vmem>>, vector<2x32xf32>,
    %c1_112 = arith.constant 1 : index
    %c0_113 = arith.constant 0 : index
    %c0_114 = arith.constant 0 : index
    %216 = vector.load %arg9[%c1_112, %c0_113, %c0_114] : memref<3x1x32xf32, #tpu.memory_space<vmem>>, vector<1x1x32xf32>
    %217 = vector.shape_cast %216 : vector<1x1x32xf32> to vector<1x32xf32>
    %c1_115 = arith.constant 1 : index
    %c0_116 = arith.constant 0 : index
    %c0_117 = arith.constant 0 : index
    %c0_118 = arith.constant 0 : index
    %218 = vector.load %arg8[%c1_115, %c0_116, %c0_117, %c0_118] : memref<3x5x32x32xf32, #tpu.memory_space<vmem>>, vector<1x1x32x32xf32>
    %219 = vector.shape_cast %218 : vector<1x1x32x32xf32> to vector<32x32xf32>
    %c0_119 = arith.constant 0 : index
    %c0_120 = arith.constant 0 : index
    %220 = tpu.strided_load %arg11[%c0_119, %c0_120] {strides = array<i32: 2, 1>} : memref<68x32xf32, #tpu.memory_space<vmem>>, vector<16x32xf32>
    %cst_121 = arith.constant dense<0.000000e+00> : vector<16x32xf32>
    %221 = tpu.matmul %220, %219, %cst_121 {dimension_numbers = #tpu.dot_dimension_numbers<[1], [0], [0], [1], [0, 0, 1, 1], [], []>} : vector<16x32xf32>, vector<32x32xf32>, vector<16x32xf32> -> vector<16x32xf32>
    %222 = vector.broadcast %217 : vector<1x32xf32> to vector<16x32xf32>
    %223 = arith.addf %222, %221 : vector<16x32xf32>
    %c1_122 = arith.constant 1 : index
    %c1_123 = arith.constant 1 : index
    %c0_124 = arith.constant 0 : index
    %c0_125 = arith.constant 0 : index
    %224 = vector.load %arg8[%c1_122, %c1_123, %c0_124, %c0_125] : memref<3x5x32x32xf32, #tpu.memory_space<vmem>>, vector<1x1x32x32xf32>
    %225 = vector.shape_cast %224 : vector<1x1x32x32xf32> to vector<32x32xf32>
    %c1_126 = arith.constant 1 : index
    %c0_127 = arith.constant 0 : index
    %226 = tpu.strided_load %arg11[%c1_126, %c0_127] {strides = array<i32: 2, 1>} : memref<68x32xf32, #tpu.memory_space<vmem>>, vector<16x32xf32>
    %cst_128 = arith.constant dense<0.000000e+00> : vector<16x32xf32>
    %227 = tpu.matmul %226, %225, %cst_128 {dimension_numbers = #tpu.dot_dimension_numbers<[1], [0], [0], [1], [0, 0, 1, 1], [], []>} : vector<16x32xf32>, vector<32x32xf32>, vector<16x32xf32> -> vector<16x32xf32>
    %228 = arith.addf %223, %227 : vector<16x32xf32>
    %c1_129 = arith.constant 1 : index
    %c2_130 = arith.constant 2 : index
    %c0_131 = arith.constant 0 : index
    %c0_132 = arith.constant 0 : index
    %229 = vector.load %arg8[%c1_129, %c2_130, %c0_131, %c0_132] : memref<3x5x32x32xf32, #tpu.memory_space<vmem>>, vector<1x1x32x32xf32>
    %230 = vector.shape_cast %229 : vector<1x1x32x32xf32> to vector<32x32xf32>
    %c2_133 = arith.constant 2 : index
    %c0_134 = arith.constant 0 : index
    %231 = tpu.strided_load %arg11[%c2_133, %c0_134] {strides = array<i32: 2, 1>} : memref<68x32xf32, #tpu.memory_space<vmem>>, vector<16x32xf32>
    %cst_135 = arith.constant dense<0.000000e+00> : vector<16x32xf32>
    %232 = tpu.matmul %231, %230, %cst_135 {dimension_numbers = #tpu.dot_dimension_numbers<[1], [0], [0], [1], [0, 0, 1, 1], [], []>} : vector<16x32xf32>, vector<32x32xf32>, vector<16x32xf32> -> vector<16x32xf32>
    %233 = arith.addf %228, %232 : vector<16x32xf32>
    %c1_136 = arith.constant 1 : index
    %c3_137 = arith.constant 3 : index
    %c0_138 = arith.constant 0 : index
    %c0_139 = arith.constant 0 : index
    %234 = vector.load %arg8[%c1_136, %c3_137, %c0_138, %c0_139] : memref<3x5x32x32xf32, #tpu.memory_space<vmem>>, vector<1x1x32x32xf32>
    %235 = vector.shape_cast %234 : vector<1x1x32x32xf32> to vector<32x32xf32>
    %c3_140 = arith.constant 3 : index
    %c0_141 = arith.constant 0 : index
    %236 = tpu.strided_load %arg11[%c3_140, %c0_141] {strides = array<i32: 2, 1>} : memref<68x32xf32, #tpu.memory_space<vmem>>, vector<16x32xf32>
    %cst_142 = arith.constant dense<0.000000e+00> : vector<16x32xf32>
    %237 = tpu.matmul %236, %235, %cst_142 {dimension_numbers = #tpu.dot_dimension_numbers<[1], [0], [0], [1], [0, 0, 1, 1], [], []>} : vector<16x32xf32>, vector<32x32xf32>, vector<16x32xf32> -> vector<16x32xf32>
    %238 = arith.addf %233, %237 : vector<16x32xf32>
    %c1_143 = arith.constant 1 : index
    %c4_144 = arith.constant 4 : index
    %c0_145 = arith.constant 0 : index
    %c0_146 = arith.constant 0 : index
    %239 = vector.load %arg8[%c1_143, %c4_144, %c0_145, %c0_146] : memref<3x5x32x32xf32, #tpu.memory_space<vmem>>, vector<1x1x32x32xf32>
    %240 = vector.shape_cast %239 : vector<1x1x32x32xf32> to vector<32x32xf32>
    %c4_147 = arith.constant 4 : index
    %c0_148 = arith.constant 0 : index
    %241 = tpu.strided_load %arg11[%c4_147, %c0_148] {strides = array<i32: 2, 1>} : memref<68x32xf32, #tpu.memory_space<vmem>>, vector<16x32xf32>
    %cst_149 = arith.constant dense<0.000000e+00> : vector<16x32xf32>
    %242 = tpu.matmul %241, %240, %cst_149 {dimension_numbers = #tpu.dot_dimension_numbers<[1], [0], [0], [1], [0, 0, 1, 1], [], []>} : vector<16x32xf32>, vector<32x32xf32>, vector<16x32xf32> -> vector<16x32xf32>
    %243 = arith.addf %238, %242 : vector<16x32xf32>
    %244 = tpu.iota {dimensions = array<i32: 0>} : vector<16x1xi32>
    %c2_150 = arith.constant 2 : index
    %c0_151 = arith.constant 0 : index
    %c0_152 = arith.constant 0 : index
    %245 = vector.load %arg2[%c2_150, %c0_151, %c0_152] : memref<3x3x32xf32, #tpu.memory_space<vmem>>, vector<1x3x32xf32>
    %246 = vector.shape_cast %245 : vector<1x3x32xf32> to vector<3x32xf32>
    %c1_i32_153 = arith.constant 1 : i32
    %247 = vector.broadcast %c1_i32_153 : i32 to vector<16x1xi32>
    %248 = arith.cmpi sge, %244, %247 : vector<16x1xi32>
    %c1_i32_154 = arith.constant 1 : i32
    %249 = tpu.dynamic_rotate %243 by %c1_i32_154 dim 0 : vector<16x32xf32>, i32 -> vector<16x32xf32>
    %cst_155 = arith.constant 0.000000e+00 : f32
    %250 = vector.shape_cast %248 : vector<16x1xi1> to vector<16x1xi1>
    %251 = vector.broadcast %250 : vector<16x1xi1> to vector<16x32xi1>
    %252 = vector.broadcast %cst_155 : f32 to vector<16x32xf32>
    %253 = arith.select %251, %249, %252 : vector<16x32xi1>, vector<16x32xf32>
    %254 = vector.extract_strided_slice %246 {offsets = [0, 0], sizes = [1, 32], strides = [1, 1]} : vector<3x32xf32> to vector<1x32xf32>
    %255 = vector.broadcast %254 : vector<1x32xf32> to vector<16x32xf32>
    %256 = arith.mulf %253, %255 : vector<16x32xf32>
    %257 = vector.extract_strided_slice %246 {offsets = [1, 0], sizes = [1, 32], strides = [1, 1]} : vector<3x32xf32> to vector<1x32xf32>
    %258 = vector.broadcast %257 : vector<1x32xf32> to vector<16x32xf32>
    %259 = arith.mulf %243, %258 : vector<16x32xf32>
    %260 = arith.addf %256, %259 : vector<16x32xf32>
    %c15_i32 = arith.constant 15 : i32
    %261 = vector.broadcast %c15_i32 : i32 to vector<16x1xi32>
    %262 = arith.cmpi slt, %244, %261 : vector<16x1xi32>
    %c15_i32_156 = arith.constant 15 : i32
    %263 = tpu.dynamic_rotate %243 by %c15_i32_156 dim 0 : vector<16x32xf32>, i32 -> vector<16x32xf32>
    %cst_157 = arith.constant 0.000000e+00 : f32
    %264 = vector.shape_cast %262 : vector<16x1xi1> to vector<16x1xi1>
    %265 = vector.broadcast %264 : vector<16x1xi1> to vector<16x32xi1>
    %266 = vector.broadcast %cst_157 : f32 to vector<16x32xf32>
    %267 = arith.select %265, %263, %266 : vector<16x32xi1>, vector<16x32xf32>
    %268 = vector.extract_strided_slice %246 {offsets = [2, 0], sizes = [1, 32], strides = [1, 1]} : vector<3x32xf32> to vector<1x32xf32>
    %269 = vector.broadcast %268 : vector<1x32xf32> to vector<16x32xf32>
    %270 = arith.mulf %267, %269 : vector<16x32xf32>
    %271 = arith.addf %260, %270 : vector<16x32xf32>
    %c2_158 = arith.constant 2 : index
    %c0_159 = arith.constant 0 : index
    %c0_160 = arith.constant 0 : index
    %272 = vector.load %arg3[%c2_158, %c0_159, %c0_160] : memref<3x3x32xf32, #tpu.memory_space<vmem>>, vector<1x3x32xf32>
    %273 = vector.shape_cast %272 : vector<1x3x32xf32> to vector<3x32xf32>
    %c3_i32_161 = arith.constant 3 : i32
    %274 = vector.broadcast %c3_i32_161 : i32 to vector<16x1xi32>
    %275 = arith.cmpi sge, %244, %274 : vector<16x1xi32>
    %c3_i32_162 = arith.constant 3 : i32
    %276 = tpu.dynamic_rotate %271 by %c3_i32_162 dim 0 : vector<16x32xf32>, i32 -> vector<16x32xf32>
    %cst_163 = arith.constant 0.000000e+00 : f32
    %277 = vector.shape_cast %275 : vector<16x1xi1> to vector<16x1xi1>
    %278 = vector.broadcast %277 : vector<16x1xi1> to vector<16x32xi1>
    %279 = vector.broadcast %cst_163 : f32 to vector<16x32xf32>
    %280 = arith.select %278, %276, %279 : vector<16x32xi1>, vector<16x32xf32>
    %281 = vector.extract_strided_slice %273 {offsets = [0, 0], sizes = [1, 32], strides = [1, 1]} : vector<3x32xf32> to vector<1x32xf32>
    %282 = vector.broadcast %281 : vector<1x32xf32> to vector<16x32xf32>
    %283 = arith.mulf %280, %282 : vector<16x32xf32>
    %284 = vector.extract_strided_slice %273 {offsets = [1, 0], sizes = [1, 32], strides = [1, 1]} : vector<3x32xf32> to vector<1x32xf32>
    %285 = vector.broadcast %284 : vector<1x32xf32> to vector<16x32xf32>
    %286 = arith.mulf %271, %285 : vector<16x32xf32>
    %287 = arith.addf %283, %286 : vector<16x32xf32>
    %c13_i32 = arith.constant 13 : i32
    %288 = vector.broadcast %c13_i32 : i32 to vector<16x1xi32>
    %289 = arith.cmpi slt, %244, %288 : vector<16x1xi32>
    %c13_i32_164 = arith.constant 13 : i32
    %290 = tpu.dynamic_rotate %271 by %c13_i32_164 dim 0 : vector<16x32xf32>, i32 -> vector<16x32xf32>
    %cst_165 = arith.constant 0.000000e+00 : f32
    %291 = vector.shape_cast %289 : vector<16x1xi1> to vector<16x1xi1>
    %292 = vector.broadcast %291 : vector<16x1xi1> to vector<16x32xi1>
    %293 = vector.broadcast %cst_165 : f32 to vector<16x32xf32>
    %294 = arith.select %292, %290, %293 : vector<16x32xi1>, vector<16x32xf32>
    %295 = vector.extract_strided_slice %273 {offsets = [2, 0], sizes = [1, 32], strides = [1, 1]} : vector<3x32xf32> to vector<1x32xf32>
    %296 = vector.broadcast %295 : vector<1x32xf32> to vector<16x32xf32>
    %297 = arith.mulf %294, %296 : vector<16x32xf32>
    %298 = arith.addf %287, %297 : vector<16x32xf32>
    %cst_166 = arith.constant dense<0.000000e+00> : vector<16xf32>
    %299 = vector.multi_reduction <add>, %298, %cst_166 [1] : vector<16x32xf32> to vector<16xf32>
    %300 = vector.shape_cast %299 : vector<16xf32> to vector<16x1xf32>
    %cst_167 = arith.constant 3.200000e+01 : f32
    %301 = vector.broadcast %cst_167 : f32 to vector<16x1xf32>
    %302 = arith.divf %300, %301 : vector<16x1xf32>
    %303 = arith.mulf %298, %298 : vector<16x32xf32>
    %cst_168 = arith.constant dense<0.000000e+00> : vector<16xf32>
    %304 = vector.multi_reduction <add>, %303, %cst_168 [1] : vector<16x32xf32> to vector<16xf32>
    %305 = vector.shape_cast %304 : vector<16xf32> to vector<16x1xf32>
    %cst_169 = arith.constant 3.200000e+01 : f32
    %306 = vector.broadcast %cst_169 : f32 to vector<16x1xf32>
    %307 = arith.divf %305, %306 : vector<16x1xf32>
    %308 = arith.mulf %302, %302 : vector<16x1xf32>
    %309 = arith.subf %307, %308 : vector<16x1xf32>
    %310 = vector.broadcast %302 : vector<16x1xf32> to vector<16x32xf32>
    %311 = arith.subf %298, %310 : vector<16x32xf32>
    %cst_170 = arith.constant 9.99999997E-7 : f32
    %312 = vector.broadcast %cst_170 : f32 to vector<16x1xf32>
    %313 = arith.addf %309, %312 : vector<16x1xf32>
    %314 = math.rsqrt %313 : vector<16x1xf32>
    %315 = vector.broadcast %314 : vector<16x1xf32> to vector<16x32xf32>
    %316 = arith.mulf %311, %315 : vector<16x32xf32>
    %c2_171 = arith.constant 2 : index
    %c0_172 = arith.constant 0 : index
    %c0_173 = arith.constant 0 : index
    %317 = vector.load %arg4[%c2_171, %c0_172, %c0_173] : memref<3x1x32xf32, #tpu.memory_space<vmem>>, vector<1x1x32xf32>
    %318 = vector.shape_cast %317 : vector<1x1x32xf32> to vector<1x32xf32>
    %319 = vector.broadcast %318 : vector<1x32xf32> to vector<16x32xf32>
    %320 = arith.mulf %316, %319 : vector<16x32xf32>
    %c2_174 = arith.constant 2 : index
    %c0_175 = arith.constant 0 : index
    %c0_176 = arith.constant 0 : index
    %321 = vector.load %arg5[%c2_174, %c0_175, %c0_176] : memref<3x1x32xf32, #tpu.memory_space<vmem>>, vector<1x1x32xf32>
    %322 = vector.shape_cast %321 : vector<1x1x32xf32> to vector<1x32xf32>
    %323 = vector.broadcast %322 : vector<1x32xf32> to vector<16x32xf32>
    %324 = arith.addf %320, %323 : vector<16x32xf32>
    %c2_177 = arith.constant 2 : index
    %c0_178 = arith.constant 0 : index
    %c0_179 = arith.constant 0 : index
    %325 = vector.load %arg6[%c2_177, %c0_178, %c0_179] : memref<3x32x32xf32, #tpu.memory_space<vmem>>, vector<1x32x32xf32>
    %326 = vector.shape_cast %325 : vector<1x32x32xf32> to vector<32x32xf32>
    %cst_180 = arith.constant dense<0.000000e+00> : vector<16x32xf32>
    %327 = tpu.matmul %324, %326, %cst_180 {dimension_numbers = #tpu.dot_dimension_numbers<[1], [0], [0], [1], [0, 0, 1, 1], [], []>} : vector<16x32xf32>, vector<32x32xf32>, vector<16x32xf32> -> vector<16x32xf32>
    %c2_181 = arith.constant 2 : index
    %c0_182 = arith.constant 0 : index
    %c0_183 = arith.constant 0 : index
    %328 = vector.load %arg7[%c2_181, %c0_182, %c0_183] : memref<3x1x32xf32, #tpu.memory_space<vmem>>, vector<1x1x32xf32>
    %329 = vector.shape_cast %328 : vector<1x1x32xf32> to vector<1x32xf32>
    %330 = vector.broadcast %329 : vector<1x32xf32> to vector<16x32xf32>
    %331 = arith.addf %327, %330 : vector<16x32xf32>
    %332 = arith.addf %331, %243 : vector<16x32xf32>
    %c2_184 = arith.constant 2 : index
    %c0_185 = arith.constant 0 : index
    %333 = vector.load %arg11[%c2_184, %c0_185] : memref<68x32xf32, #tpu.memory_space<vmem>>, vector<16x32xf32>
    tpu.vector_store %arg11[%c2_184, %c0_185], %332 {strides = array<i32>} : memref<68x32xf32, #tpu.memory_space<vmem>>, vector<16x32xf32>,
    %cst_186 = arith.constant 0.000000e+00 : f32
    %334 = vector.broadcast %cst_186 : f32 to vector<2x32xf32>
    %c18 = arith.constant 18 : index
    %c0_187 = arith.constant 0 : index
    %335 = vector.load %arg11[%c18, %c0_187] : memref<68x32xf32, #tpu.memory_space<vmem>>, vector<2x32xf32>
    tpu.vector_store %arg11[%c18, %c0_187], %334 {strides = array<i32>} : memref<68x32xf32, #tpu.memory_space<vmem>>, vector<2x32xf32>,
    %c2_188 = arith.constant 2 : index
    %c0_189 = arith.constant 0 : index
    %c0_190 = arith.constant 0 : index
    %336 = vector.load %arg9[%c2_188, %c0_189, %c0_190] : memref<3x1x32xf32, #tpu.memory_space<vmem>>, vector<1x1x32xf32>
    %337 = vector.shape_cast %336 : vector<1x1x32xf32> to vector<1x32xf32>
    %c2_191 = arith.constant 2 : index
    %c0_192 = arith.constant 0 : index
    %c0_193 = arith.constant 0 : index
    %c0_194 = arith.constant 0 : index
    %338 = vector.load %arg8[%c2_191, %c0_192, %c0_193, %c0_194] : memref<3x5x32x32xf32, #tpu.memory_space<vmem>>, vector<1x1x32x32xf32>
    %339 = vector.shape_cast %338 : vector<1x1x32x32xf32> to vector<32x32xf32>
    %c0_195 = arith.constant 0 : index
    %c0_196 = arith.constant 0 : index
    %340 = tpu.strided_load %arg11[%c0_195, %c0_196] {strides = array<i32: 2, 1>} : memref<68x32xf32, #tpu.memory_space<vmem>>, vector<8x32xf32>
    %cst_197 = arith.constant dense<0.000000e+00> : vector<8x32xf32>
    %341 = tpu.matmul %340, %339, %cst_197 {dimension_numbers = #tpu.dot_dimension_numbers<[1], [0], [0], [1], [0, 0, 1, 1], [], []>} : vector<8x32xf32>, vector<32x32xf32>, vector<8x32xf32> -> vector<8x32xf32>
    %342 = vector.broadcast %337 : vector<1x32xf32> to vector<8x32xf32>
    %343 = arith.addf %342, %341 : vector<8x32xf32>
    %c2_198 = arith.constant 2 : index
    %c1_199 = arith.constant 1 : index
    %c0_200 = arith.constant 0 : index
    %c0_201 = arith.constant 0 : index
    %344 = vector.load %arg8[%c2_198, %c1_199, %c0_200, %c0_201] : memref<3x5x32x32xf32, #tpu.memory_space<vmem>>, vector<1x1x32x32xf32>
    %345 = vector.shape_cast %344 : vector<1x1x32x32xf32> to vector<32x32xf32>
    %c1_202 = arith.constant 1 : index
    %c0_203 = arith.constant 0 : index
    %346 = tpu.strided_load %arg11[%c1_202, %c0_203] {strides = array<i32: 2, 1>} : memref<68x32xf32, #tpu.memory_space<vmem>>, vector<8x32xf32>
    %cst_204 = arith.constant dense<0.000000e+00> : vector<8x32xf32>
    %347 = tpu.matmul %346, %345, %cst_204 {dimension_numbers = #tpu.dot_dimension_numbers<[1], [0], [0], [1], [0, 0, 1, 1], [], []>} : vector<8x32xf32>, vector<32x32xf32>, vector<8x32xf32> -> vector<8x32xf32>
    %348 = arith.addf %343, %347 : vector<8x32xf32>
    %c2_205 = arith.constant 2 : index
    %c2_206 = arith.constant 2 : index
    %c0_207 = arith.constant 0 : index
    %c0_208 = arith.constant 0 : index
    %349 = vector.load %arg8[%c2_205, %c2_206, %c0_207, %c0_208] : memref<3x5x32x32xf32, #tpu.memory_space<vmem>>, vector<1x1x32x32xf32>
    %350 = vector.shape_cast %349 : vector<1x1x32x32xf32> to vector<32x32xf32>
    %c2_209 = arith.constant 2 : index
    %c0_210 = arith.constant 0 : index
    %351 = tpu.strided_load %arg11[%c2_209, %c0_210] {strides = array<i32: 2, 1>} : memref<68x32xf32, #tpu.memory_space<vmem>>, vector<8x32xf32>
    %cst_211 = arith.constant dense<0.000000e+00> : vector<8x32xf32>
    %352 = tpu.matmul %351, %350, %cst_211 {dimension_numbers = #tpu.dot_dimension_numbers<[1], [0], [0], [1], [0, 0, 1, 1], [], []>} : vector<8x32xf32>, vector<32x32xf32>, vector<8x32xf32> -> vector<8x32xf32>
    %353 = arith.addf %348, %352 : vector<8x32xf32>
    %c2_212 = arith.constant 2 : index
    %c3_213 = arith.constant 3 : index
    %c0_214 = arith.constant 0 : index
    %c0_215 = arith.constant 0 : index
    %354 = vector.load %arg8[%c2_212, %c3_213, %c0_214, %c0_215] : memref<3x5x32x32xf32, #tpu.memory_space<vmem>>, vector<1x1x32x32xf32>
    %355 = vector.shape_cast %354 : vector<1x1x32x32xf32> to vector<32x32xf32>
    %c3_216 = arith.constant 3 : index
    %c0_217 = arith.constant 0 : index
    %356 = tpu.strided_load %arg11[%c3_216, %c0_217] {strides = array<i32: 2, 1>} : memref<68x32xf32, #tpu.memory_space<vmem>>, vector<8x32xf32>
    %cst_218 = arith.constant dense<0.000000e+00> : vector<8x32xf32>
    %357 = tpu.matmul %356, %355, %cst_218 {dimension_numbers = #tpu.dot_dimension_numbers<[1], [0], [0], [1], [0, 0, 1, 1], [], []>} : vector<8x32xf32>, vector<32x32xf32>, vector<8x32xf32> -> vector<8x32xf32>
    %358 = arith.addf %353, %357 : vector<8x32xf32>
    %c2_219 = arith.constant 2 : index
    %c4_220 = arith.constant 4 : index
    %c0_221 = arith.constant 0 : index
    %c0_222 = arith.constant 0 : index
    %359 = vector.load %arg8[%c2_219, %c4_220, %c0_221, %c0_222] : memref<3x5x32x32xf32, #tpu.memory_space<vmem>>, vector<1x1x32x32xf32>
    %360 = vector.shape_cast %359 : vector<1x1x32x32xf32> to vector<32x32xf32>
    %c4_223 = arith.constant 4 : index
    %c0_224 = arith.constant 0 : index
    %361 = tpu.strided_load %arg11[%c4_223, %c0_224] {strides = array<i32: 2, 1>} : memref<68x32xf32, #tpu.memory_space<vmem>>, vector<8x32xf32>
    %cst_225 = arith.constant dense<0.000000e+00> : vector<8x32xf32>
    %362 = tpu.matmul %361, %360, %cst_225 {dimension_numbers = #tpu.dot_dimension_numbers<[1], [0], [0], [1], [0, 0, 1, 1], [], []>} : vector<8x32xf32>, vector<32x32xf32>, vector<8x32xf32> -> vector<8x32xf32>
    %363 = arith.addf %358, %362 : vector<8x32xf32>
    %c0_226 = arith.constant 0 : index
    %c0_227 = arith.constant 0 : index
    %c0_228 = arith.constant 0 : index
    %364 = vector.load %arg10[%c0_226, %c0_227, %c0_228] : memref<1x8x32xf32, #tpu.memory_space<vmem>>, vector<1x8x32xf32>
    %365 = vector.shape_cast %364 : vector<1x8x32xf32> to vector<8x32xf32>
    %366 = vector.shape_cast %363 : vector<8x32xf32> to vector<1x8x32xf32>
    tpu.vector_store %arg10[%c0_226, %c0_227, %c0_228], %366 {strides = array<i32>} : memref<1x8x32xf32, #tpu.memory_space<vmem>>, vector<1x8x32xf32>,
    return
  }
  func.func @transform_0(%arg0: i32) -> (i32, i32, i32) {
    %c0_i32 = arith.constant 0 : i32
    %c0_i32_0 = arith.constant 0 : i32
    %c0_i32_1 = arith.constant 0 : i32
    return %arg0, %c0_i32, %c0_i32_0 : i32, i32, i32
  }
  func.func @transform_1(%arg0: i32) -> (i32, i32, i32) {
    %c0_i32 = arith.constant 0 : i32
    %c0_i32_0 = arith.constant 0 : i32
    %c0_i32_1 = arith.constant 0 : i32
    %c0_i32_2 = arith.constant 0 : i32
    return %c0_i32, %c0_i32_0, %c0_i32_1 : i32, i32, i32
  }
  func.func @transform_2(%arg0: i32) -> (i32, i32, i32) {
    %c0_i32 = arith.constant 0 : i32
    %c0_i32_0 = arith.constant 0 : i32
    %c0_i32_1 = arith.constant 0 : i32
    %c0_i32_2 = arith.constant 0 : i32
    return %c0_i32, %c0_i32_0, %c0_i32_1 : i32, i32, i32
  }
  func.func @transform_3(%arg0: i32) -> (i32, i32, i32) {
    %c0_i32 = arith.constant 0 : i32
    %c0_i32_0 = arith.constant 0 : i32
    %c0_i32_1 = arith.constant 0 : i32
    %c0_i32_2 = arith.constant 0 : i32
    return %c0_i32, %c0_i32_0, %c0_i32_1 : i32, i32, i32
  }
  func.func @transform_4(%arg0: i32) -> (i32, i32, i32) {
    %c0_i32 = arith.constant 0 : i32
    %c0_i32_0 = arith.constant 0 : i32
    %c0_i32_1 = arith.constant 0 : i32
    %c0_i32_2 = arith.constant 0 : i32
    return %c0_i32, %c0_i32_0, %c0_i32_1 : i32, i32, i32
  }
  func.func @transform_5(%arg0: i32) -> (i32, i32, i32) {
    %c0_i32 = arith.constant 0 : i32
    %c0_i32_0 = arith.constant 0 : i32
    %c0_i32_1 = arith.constant 0 : i32
    %c0_i32_2 = arith.constant 0 : i32
    return %c0_i32, %c0_i32_0, %c0_i32_1 : i32, i32, i32
  }
  func.func @transform_6(%arg0: i32) -> (i32, i32, i32) {
    %c0_i32 = arith.constant 0 : i32
    %c0_i32_0 = arith.constant 0 : i32
    %c0_i32_1 = arith.constant 0 : i32
    %c0_i32_2 = arith.constant 0 : i32
    return %c0_i32, %c0_i32_0, %c0_i32_1 : i32, i32, i32
  }
  func.func @transform_7(%arg0: i32) -> (i32, i32, i32, i32) {
    %c0_i32 = arith.constant 0 : i32
    %c0_i32_0 = arith.constant 0 : i32
    %c0_i32_1 = arith.constant 0 : i32
    %c0_i32_2 = arith.constant 0 : i32
    %c0_i32_3 = arith.constant 0 : i32
    return %c0_i32, %c0_i32_0, %c0_i32_1, %c0_i32_2 : i32, i32, i32, i32
  }
  func.func @transform_8(%arg0: i32) -> (i32, i32, i32) {
    %c0_i32 = arith.constant 0 : i32
    %c0_i32_0 = arith.constant 0 : i32
    %c0_i32_1 = arith.constant 0 : i32
    %c0_i32_2 = arith.constant 0 : i32
    return %c0_i32, %c0_i32_0, %c0_i32_1 : i32, i32, i32
  }
  func.func @transform_9(%arg0: i32) -> (i32, i32, i32) {
    %c0_i32 = arith.constant 0 : i32
    %c0_i32_0 = arith.constant 0 : i32
    %c0_i32_1 = arith.constant 0 : i32
    return %arg0, %c0_i32, %c0_i32_0 : i32, i32, i32
  }
}

</mosaic_0001>

<bundles_post_ra>
// kernel: dyconv_forward.1
= control target key start
LH: loop header
LB: loop body
LE: loop exit
PB: predicated region body
PF: predicated region fallthrough
CT: control target
= control target key end

     0   :  { %14 = vsyncpa [#allocation4], 0  ;;  %s4537_s0 = inlined_call_operand.vmem [shape: f32[2,64,32], index: 0, kind: input, shape index: {}]   ;;  %s4538_s1 = inlined_call_operand.vmem [shape: f32[3,3,32], index: 1, kind: input, shape index: {}]   ;;  %s4539_s2 = inlined_call_operand.vmem [shape: f32[3,3,32], index: 2, kind: input, shape index: {}]   ;;  %s4540_s3 = inlined_call_operand.vmem [shape: f32[3,1,32], index: 3, kind: input, shape index: {}]   ;;  %s4541_s4 = inlined_call_operand.vmem [shape: f32[3,1,32], index: 4, kind: input, shape index: {}]   ;;  %s4542_s5 = inlined_call_operand.vmem [shape: f32[3,32,32], index: 5, kind: input, shape index: {}]   ;;  %s4543_s6 = inlined_call_operand.vmem [shape: f32[3,1,32], index: 6, kind: input, shape index: {}]   ;;  %s4544_s7 = inlined_call_operand.hbm [shape: f32[3,5,32,32], index: 7, kind: input, shape index: {}]   ;;  %s4545_s8 = inlined_call_operand.vmem [shape: f32[3,1,32], index: 8, kind: input, shape index: {}]   ;;  %s4546_s9 = inlined_call_operand.hbm [shape: f32[2,8,32], index: 9, kind: output, shape index: {}]  }
   0x1   :  { %15 = vsyncpa [#allocation5], 0 }
   0x2   :  { %17 = vsyncpa [#allocation5 + $0x1], 0  ;;  %s3750_s30 = smov 0   ;;  %s3752_s10 = smov 0  }
   0x3   :  { %s3754_s11 = smov 0   ;;  %s3756_s12 = smov 0  }
   0x4 LB: > { %s3771_s13 = sadd.s32 4294967295, %s3692_s12   ;;  %s3079_s14 = sadd.s32 4294967294, %s3692_s12   ;;  %s3692_s12 = sphi %s3756_s12, %s4554_s12   ;;  %s3688_s11 = sphi %s3754_s11, %s4553_s11   ;;  %s3684_s10 = sphi %s3752_s10, %s4552_s10   ;;  %s3680_s30 = sphi %s3750_s30, %s4551_s30  }
   0x5   : > { %s3775_s15 = sadd.s32 1, %s3692_s12   ;;  %s224_s16 = sadd.s32 1, %s3688_s11 }
   0x6   : > { %s221_s17 = ssub.s32 %s3692_s12, %s3775_s15  ;;  %p234_p0 = scmp.ne.s32.totalorder %s3688_s11, %s3684_s10 }
   0x7   : > { %p222_p1 = scmp.eq.s32.totalorder %s221_s17, 0  ;;  %p235_p2 = scmp.eq.s32.totalorder %s3771_s13, 1 }
   0x8   : > { %p240_p3 = scmp.ne.s32.totalorder %s3684_s10, %s3680_s30  ;;  %p241_p4 = scmp.eq.s32.totalorder %s3079_s14, 1 }
   0x9   : > { %s3786_s18 = scalar_select %p222_p1, %s3688_s11, %s224_s16  }
   0xa   : > { %p3788_p5 = por %p235_p2, %p234_p0  ;;  %p3792_p6 = por %p241_p4, %p240_p3 }
   0xb   : > { %p3080_p7 = scmp.ge.s32.totalorder %s3692_s12, 1  ;;  %p248_p8 = scmp.lt.s32.totalorder %s3692_s12, 3 }
   0xc   : > { %s4548_s20 = scalar_select %p3792_p6, 1, 0 }
   0xd   : > { %p3534_p9 = scmp.eq.s32.totalorder %s3771_s13, 0  ;;  %p3799_p10 = pnand %p3080_p7, %p248_p8 }
   0xe   : > { %s3694_s22 = smov [#allocation3]  }
   0xf   : > { %s278_s23 = sshll.u32 %s3694_s22, 4  ;;  %p3526_p11 = pneg %p3799_p10  ;;  %s279_s23 = int_to_ptr.vmem [resolvable:$true] %s278_s23 }
  0x10   : > { %s3613_s24 = scalar_lea.vmem %s279_s23, 7680  ;;  %p3621_p3 = scmp.lt.s32.totalorder %s279_s23, %s279_s23 }
  0x11   : > { %p3527_p12 = pnand %p3534_p9, %p3526_p11  ;;  %p3614_p0 = scmp.ne.s32.totalorder %s279_s23, %s3613_s24 }
  0x12   : > { %p3622_p4 = scmp.lt.s32.totalorder %s3613_s24, %s3613_s24 }
  0x13   : > { %p3604_p13 = pneg %p3527_p12 }
  0x14   : > { %p3623_p6 = por %p3622_p4, %p3621_p3 }
  0x15   : > { %p3616_p1 = pnand %p3614_p0, %p3604_p13 }
  0x17   : > { %p3617_p2 = pneg %p3616_p1 }
  0x19   : > { %p3624_p7 = pnand %p3623_p6, %p3617_p2 }
  0x1b   : > { %3627 = shalt.err (!%p3624_p7)
}
  0x1c   : > { %s3695_s25 = smov 128   ;;  %s3696_s26 = smov 8  }
  0x1d   : > { %3529 = dma.hbm_to_vmem [thread:$0]  (!%p3527_p12), %s4544_s7, 7680, %s279_s23, [#allocation4], %s3695_s25, %s3695_s25, %s3696_s26  }
  0x1e   : > { %305 = sbr.rel (%p3799_p10) target bundleno = 1931 (0x78b), region = 56 }
  0x23   : > { %3671 = dma.done.wait (%p3534_p9), [#allocation4], 7680  }
  0x24   : > { %3673 = vsyncadd (%p3534_p9), [#allocation4], 4294959616  ;;  %p341_p8 = scmp.lt.s32.totalorder %s3771_s13, 1  ;;  %v356_v0 = vlaneseq  ;;  %v365_v9 = vld [vmem:[%s4538_s1] sm:$0x7]  ;;  %vm667_vm5 = vcmask 261120  }
  0x25   : > { %v516_v26 = vld [vmem:[%s4539_s2] sm:$0x7]  ;;  %vm346_vm9 = vcmask 254976   ;;  %vm3698_vm14 = vmmov 0   ;;  %s338_s21 = sand.u32 1, %s3684_s10   ;;  %s3170_s24 = sshll.u32 %s3771_s13, 7 }
  0x26   : > { %s342_s29 = scalar_select %p341_p8, %s3771_s13, 1  ;;  %v3818_v1 = vshrl.u32 %v356_v0, 7 }
  0x27   : > { %s3085_s23 = sshll.u32 %s338_s21, 3  ;;  %s3699_s13 = smov [#allocation6]  }
  0x28   : > { %s3173_s14 = sshll.u32 %s342_s29, 6  ;;  %v3826_v2 = vsub.s32 0, %v3818_v1  ;;  %v3829_v3 = vsub.s32 1, %v3818_v1  ;;  %vm382_vm0 = vcmp.lt.s32.totalorder %v3818_v1, 1  ;;  %vm463_vm1 = vcmp.lt.s32.totalorder %v3818_v1, 7  ;;  %s340_s25 = scalar_lea.vmem [#allocation6], %s3085_s23 }
  0x29   : > { %s3823_s22 = scalar_lea.vmem %s4537_s0, %s3173_s14  ;;  %v3843_v7 = vsub.s32 2, %v3818_v1  ;;  %v3854_v12 = vadd.s32 56, %v3818_v1  ;;  %vm533_vm2 = vcmp.lt.s32.totalorder %v3818_v1, 3  ;;  %vm614_vm3 = vcmp.lt.s32.totalorder %v3818_v1, 5  ;;  %s3008_s26 = sshll.u32 %s340_s25, 4  ;;  %s3009_s26 = int_to_ptr.vmem [resolvable:$true] %s3008_s26 }
  0x2a   : > { %v3832_v4 = vld [vmem:[%s3823_s22 + $0x8] sm:$0xff]  ;;  %v3835_v5 = vld [vmem:[%s3823_s22 + $0x10] sm:$0xff]  ;;  %v3838_v6 = vld [vmem:[%s3823_s22 + $0x18] sm:$0xff]  ;;  %v3859_v15 = vrot.slane %v365_v9, %v3826_v2  ;;  %v3862_v16 = vrot.slane %v365_v9, %v3829_v3  ;;  %v3902_v39 = vrot.slane %v516_v26, %v3826_v2  ;;  %v3907_v41 = vrot.slane %v516_v26, %v3829_v3  ;;  %s4501_s29 = scalar_lea.hbm %s4546_s9, %s3170_s24  ;;  %s2995_s14 = scalar_lea.sflag [#allocation5], %s338_s21 }
  0x2b   : > { %v3846_v8 = vld [vmem:[%s3823_s22 + $0x20] sm:$0xff]  ;;  %v375_v10 = vrot.slane %v3832_v4, 7  ;;  %v376_v11 = vrot.slane %v3835_v5, 7  ;;  %v377_v13 = vrot.slane %v3838_v6, 7  ;;  %v3865_v17 = vld [vmem:[%s3823_s22 + $0x28] sm:$0xff]  ;;  %v457_v19 = vrot.slane %v3835_v5, 1 }
  0x2c   : > { %v378_v14 = vrot.slane %v3846_v8, 7  ;;  %v458_v20 = vrot.slane %v3838_v6, 1  ;;  %v459_v21 = vrot.slane %v3846_v8, 1  ;;  %v433_v25 = vmul.f32 %v3862_v16, %v3835_v5  ;;  %v3891_v31 = vld [vmem:[%s3823_s22] sm:$0xff]  ;;  %v3919_v48 = vld [vmem:[%s3823_s22 + $0x30] sm:$0xff]  ;;  %v3922_v49 = vld [vmem:[%s3823_s22 + $0x38] sm:$0xff] }
  0x2d   : > { %v388_v18 = vsel %vm382_vm0, %v375_v10, %v376_v11  ;;  %v387_v23 = vsel %vm382_vm0, %v376_v11, %v377_v13  ;;  %v434_v29 = vmul.f32 %v3862_v16, %v3838_v6  ;;  %v435_v30 = vmul.f32 %v3862_v16, %v3846_v8  ;;  %s3628_s16 = scalar_lea.vmem %s3009_s26, 128  ;;  %s3632_s17 = sshll.u32 %s3699_s13, 4  ;;  %s3633_s17 = int_to_ptr.vmem [resolvable:$false] %s3632_s17 }
  0x2e   : > { %v386_v22 = vsel %vm382_vm0, %v377_v13, %v378_v14  ;;  %v421_v24 = vmul.f32 %v3859_v15, %v388_v18  ;;  %v422_v27 = vmul.f32 %v3859_v15, %v387_v23  ;;  %v460_v33 = vrot.slane %v3865_v17, 1  ;;  %p3629_p6 = scmp.ne.s32.totalorder %s3009_s26, %s3628_s16  ;;  %s3634_s22 = scalar_lea.vmem %s3633_s17, 256 }
  0x2f   : > { %v423_v28 = vmul.f32 %v3859_v15, %v386_v22  ;;  %v467_v34 = vsel %vm463_vm1, %v458_v20, %v459_v21  ;;  %v468_v35 = vsel %vm463_vm1, %v457_v19, %v458_v20  ;;  %v3899_v38 = vrot.slane %v365_v9, %v3843_v7  ;;  %p3635_p11 = scmp.lt.s32.totalorder %s3009_s26, %s3633_s17  ;;  %p3636_p12 = scmp.lt.s32.totalorder %s3634_s22, %s3628_s16 }
  0x30   : > { %v441_v32 = vadd.f32 %v433_v25, %v421_v24  ;;  %v442_v36 = vadd.f32 %v434_v29, %v422_v27  ;;  %v466_v40 = vsel %vm463_vm1, %v459_v21, %v460_v33  ;;  %v3910_v42 = vrot.slane %v516_v26, %v3843_v7  ;;  %p3630_p9 = pnand %p3629_p6, %p3788_p5 }
  0x31   : > { %v443_v37 = vadd.f32 %v435_v30, %v423_v28  ;;  %v374_v43 = vrot.slane %v3891_v31, 7  ;;  %v502_v44 = vmul.f32 %v3899_v38, %v468_v35  ;;  %v503_v45 = vmul.f32 %v3899_v38, %v467_v34  ;;  %p3637_p13 = por %p3636_p12, %p3635_p11 }
  0x32   : > { %v504_v46 = vmul.f32 %v3899_v38, %v466_v40  ;;  %v432_v47 = vmul.f32 %v3862_v16, %v3832_v4  ;;  %vm366_vm4 = vcmp.ge.s32.totalorder %v3818_v1, 1  ;;  %v456_v51 = vrot.slane %v3832_v4, 1  ;;  %p3631_p10 = pneg %p3630_p9 }
  0x33   : > { %v389_v50 = vsel %vm382_vm0, %v374_v43, %v375_v10  ;;  %v379_v52 = vrot.slane %v3865_v17, 7  ;;  %v436_v53 = vmul.f32 %v3862_v16, %v3865_v17  ;;  %v3931_v54 = vadd.f32 %v502_v44, %v441_v32 }
  0x34   : > { %v511_v55 = vadd.f32 %v503_v45, %v442_v36  ;;  %v3933_v56 = vadd.f32 %v504_v46, %v443_v37  ;;  %v420_v57 = vmul.f32 %v3859_v15, %v389_v50  ;;  %v469_v58 = vsel %vm463_vm1, %v456_v51, %v457_v19  ;;  %p3638_p0 = pnand %p3637_p13, %p3631_p10 }
  0x35   : > { %v385_v59 = vsel %vm382_vm0, %v378_v14, %v379_v52  ;;  %v461_v60 = vrot.slane %v3919_v48, 1  ;;  %v381_v61 = vrot.slane %v3922_v49, 7  ;;  %v527_v62 = vrot.slane %v3931_v54, 5 }
  0x36   : > { %v528_v63 = vrot.slane %v511_v55, 5  ;;  %v585_v0 = vmul.f32 %v3907_v41, %v511_v55  ;;  %v609_v9 = vrot.slane %v511_v55, 3  ;;  %v610_v10 = vrot.slane %v3933_v56, 3 }
  0x37   : > { %v440_v11 = vadd.f32 %v432_v47, %v420_v57  ;;  %v501_v13 = vmul.f32 %v3899_v38, %v469_v58  ;;  %v584_v18 = vmul.f32 %v3907_v41, %v3931_v54  ;;  %v608_v19 = vrot.slane %v3931_v54, 3 }
  0x38   : > { %v538_v14 = vsel %vm533_vm2, %v527_v62, %v528_v63  ;;  %v424_v20 = vmul.f32 %v3859_v15, %v385_v59  ;;  %v465_v21 = vsel %vm463_vm1, %v460_v33, %v461_v60  ;;  %v618_v23 = vsel %vm614_vm3, %v609_v9, %v610_v10 }
  0x39   : > { %v573_v22 = vmul.f32 %v3902_v39, %v538_v14  ;;  %v3961_v24 = vadd.f32 %v501_v13, %v440_v11  ;;  %v505_v25 = vmul.f32 %v3899_v38, %v465_v21  ;;  %v654_v26 = vmul.f32 %v3910_v42, %v618_v23 }
  0x3a   : > { %v619_v27 = vsel %vm614_vm3, %v608_v19, %v609_v9  ;;  %v444_v28 = vadd.f32 %v436_v53, %v424_v20  ;;  %v529_v29 = vrot.slane %v3933_v56, 5  ;;  %v586_v34 = vmul.f32 %v3907_v41, %v3933_v56 }
  0x3b   : > { %v593_v30 = vadd.f32 %v585_v0, %v573_v22  ;;  %v526_v32 = vrot.slane %v3961_v24, 5  ;;  %v653_v33 = vmul.f32 %v3910_v42, %v619_v27  ;;  %v390_v37 = vsel %vm382_vm0, %v381_v61, %v374_v43 }
  0x3c   : > { %v3972_v35 = vadd.f32 %v505_v25, %v444_v28  ;;  %v537_v36 = vsel %vm533_vm2, %v528_v63, %v529_v29  ;;  %v431_v40 = vmul.f32 %v3862_v16, %v3891_v31  ;;  %v407_v47 = vsel %vm366_vm4, %v390_v37, 0.0 }
  0x3d   : > { %v3982_v44 = vadd.f32 %v654_v26, %v593_v30  ;;  %v539_v45 = vsel %vm533_vm2, %v526_v32, %v527_v62  ;;  %v574_v46 = vmul.f32 %v3902_v39, %v537_v36  ;;  %v419_v54 = vmul.f32 %v3859_v15, %v407_v47 }
  0x3e   : > { %v572_v50 = vmul.f32 %v3902_v39, %v539_v45  ;;  %v611_v53 = vrot.slane %v3972_v35, 3  ;;  %v455_v43 = vrot.slane %v3891_v31, 1  ;;  %v607_v14 = vrot.slane %v3961_v24, 3 }
  0x3f   : > { %v677_v55 = vsel %vm667_vm5, %v3982_v44, 0.0  ;;  %v704_v57 = vmul.f32 %v3982_v44, %v3982_v44  ;;  %v594_v58 = vadd.f32 %v586_v34, %v574_v46  ;;  %v439_v63 = vadd.f32 %v431_v40, %v419_v54 }
  0x40   : > { %678 = vadd.xlane.f32.xlu1 %v677_v55  ;;  %v592_v59 = vadd.f32 %v584_v18, %v572_v50  ;;  %v617_v62 = vsel %vm614_vm3, %v610_v10, %v611_v53  ;;  %v470_v0 = vsel %vm463_vm1, %v455_v43, %v456_v51  ;;  %v380_v18 = vrot.slane %v3919_v48, 7 }
  0x41   : > { %v718_v9 = vsel %vm667_vm5, %v704_v57, 0.0  ;;  %v655_v11 = vmul.f32 %v3910_v42, %v617_v62  ;;  %v500_v13 = vmul.f32 %v3899_v38, %v470_v0  ;;  %v438_v21 = vmul.f32 %v3862_v16, %v3922_v49 }
  0x42   : > { %v4007_v20 = vadd.f32 %v653_v33, %v592_v59  ;;  %vm454_vm6 = vcmp.lt.s32.totalorder %v3854_v12, 63  ;;  %v620_v22 = vsel %vm614_vm3, %v607_v14, %v608_v19  ;;  %v462_v23 = vrot.slane %v3922_v49, 1 }
  0x43   : > { %v4013_v10 = vadd.f32 %v655_v11, %v594_v58  ;;  %v508_v51 = vadd.f32 %v500_v13, %v439_v63  ;;  %v383_v26 = vsel %vm382_vm0, %v380_v18, %v381_v61  ;;  %v384_v27 = vsel %vm382_vm0, %v379_v52, %v380_v18 }
  0x44   : > { %v674_v25 = vsel %vm667_vm5, %v4007_v20, 0.0  ;;  %719 = vadd.xlane.f32.xlu1 %v718_v9  ;;  %v583_v30 = vmul.f32 %v3907_v41, %v3961_v24  ;;  %v426_v19 = vmul.f32 %v3859_v15, %v383_v26  ;;  %v471_v33 = vsel %vm463_vm1, %v462_v23, %v455_v43 }
  0x45   : > { %675 = vadd.xlane.f32.xlu0 %v674_v25  ;;  %v525_v28 = vrot.slane %v508_v51, 5  ;;  %v680_v34 = vsel %vm667_vm5, %v4013_v10, 0.0  ;;  %v652_v61 = vmul.f32 %v3910_v42, %v620_v22  ;;  %v495_v36 = vsel %vm454_vm6, %v471_v33, 0.0 }
  0x46   : > { %v425_v52 = vmul.f32 %v3859_v15, %v384_v27  ;;  %v446_v40 = vadd.f32 %v438_v21, %v426_v19  ;;  %v507_v24 = vmul.f32 %v3899_v38, %v495_v36  ;;  %v437_v45 = vmul.f32 %v3862_v16, %v3919_v48 }
  0x47   : > { %v540_v37 = vsel %vm533_vm2, %v525_v28, %v526_v32  ;;  %v606_v47 = vrot.slane %v508_v51, 3  ;;  %v464_v50 = vsel %vm463_vm1, %v461_v60, %v462_v23  ;;  %v530_v54 = vrot.slane %v3972_v35, 5 }
  0x48   : > { %v571_v46 = vmul.f32 %v3902_v39, %v540_v37  ;;  %v515_v15 = vadd.f32 %v507_v24, %v446_v40  ;;  %v445_v43 = vadd.f32 %v437_v45, %v425_v52  ;;  %v506_v32 = vmul.f32 %v3899_v38, %v464_v50 }
  0x49   : > { %681 = vadd.xlane.f32.xlu0 %v680_v34  ;;  %v536_v16 = vsel %vm533_vm2, %v529_v29, %v530_v54  ;;  %vm517_vm7 = vcmp.ge.s32.totalorder %v3818_v1, 3  ;;  %v582_v60 = vmul.f32 %v3907_v41, %v508_v51  ;;  %v621_v62 = vsel %vm614_vm3, %v606_v47, %v607_v14 }
  0x4a   : > { %v591_v55 = vadd.f32 %v583_v30, %v571_v46  ;;  %v532_v57 = vrot.slane %v515_v15, 5  ;;  %v514_v58 = vadd.f32 %v506_v32, %v445_v43  ;;  %v575_v63 = vmul.f32 %v3902_v39, %v536_v16 }
  0x4b   : > { %v587_v56 = vmul.f32 %v3907_v41, %v3972_v35  ;;  %v651_v18 = vmul.f32 %v3910_v42, %v621_v62  ;;  %v613_v51 = vrot.slane %v515_v15, 3  ;;  %vm605_vm8 = vcmp.lt.s32.totalorder %v3854_v12, 61 }
  0x4c   : > { %v4054_v59 = vadd.f32 %v652_v61, %v591_v55  ;;  %v541_v38 = vsel %vm533_vm2, %v532_v57, %v525_v28  ;;  %v612_v29 = vrot.slane %v514_v58, 3  ;;  %v531_v13 = vrot.slane %v514_v58, 5 }
  0x4d   : > { %v558_v11 = vsel %vm517_vm7, %v541_v38, 0.0  ;;  %v595_v26 = vadd.f32 %v587_v56, %v575_v63  ;;  %v703_v28 = vmul.f32 %v4007_v20, %v4007_v20  ;;  %v622_v30 = vsel %vm614_vm3, %v613_v51, %v606_v47  ;;  %v822_v63 = vld [vmem:[%s4542_s5 + $0x18] sm:$0xff]  ;;  %v821_v56 = vld [vmem:[%s4542_s5 + $0x10] sm:$0xff] }
  0x4e   : > { %v702_v0 = vmul.f32 %v4054_v59, %v4054_v59  ;;  %v671_v9 = vsel %vm667_vm5, %v4054_v59, 0.0  ;;  %v570_v14 = vmul.f32 %v3902_v39, %v558_v11  ;;  %v616_v21 = vsel %vm614_vm3, %v611_v53, %v612_v29  ;;  %3295 = vmatprep.subr.mxu0 %v822_v63 }
  0x4f   : > { %672 = vadd.xlane.f32.xlu0 %v671_v9  ;;  %v535_v23 = vsel %vm533_vm2, %v530_v54, %v531_v13  ;;  %v656_v27 = vmul.f32 %v3910_v42, %v616_v21  ;;  %v534_v35 = vsel %vm533_vm2, %v531_v13, %v532_v57  ;;  %v588_v33 = vmul.f32 %v3907_v41, %v514_v58 }
  0x50   : > { %v712_v22 = vsel %vm667_vm5, %v702_v0, 0.0  ;;  %v590_v25 = vadd.f32 %v582_v60, %v570_v14  ;;  %v576_v19 = vmul.f32 %v3902_v39, %v535_v23  ;;  %v589_v34 = vmul.f32 %v3907_v41, %v515_v15  ;;  %3296 = vmatpush3.msra.mxu0 %v822_v63  ;;  %v819_v0 = vld [vmem:[%s4542_s5] sm:$0xff] }
  0x51   : > { %713 = vadd.xlane.f32.xlu1 %v712_v22  ;;  %v615_v61 = vsel %vm614_vm3, %v612_v29, %v613_v51  ;;  %v4098_v52 = vadd.f32 %v656_v27, %v595_v26  ;;  %v577_v37 = vmul.f32 %v3902_v39, %v534_v35  ;;  %v705_v40 = vmul.f32 %v4013_v10, %v4013_v10  ;;  %v820_v29 = vld [vmem:[%s4542_s5 + $0x8] sm:$0xff] }
  0x52   : > { %v4085_v53 = vadd.f32 %v651_v18, %v590_v25  ;;  %v646_v24 = vsel %vm605_vm8, %v622_v30, 0.0  ;;  %v715_v45 = vsel %vm667_vm5, %v703_v28, 0.0  ;;  %v596_v46 = vadd.f32 %v588_v33, %v576_v19  ;;  %3297 = vmatprep.subr.mxu0 %v821_v56 }
  0x53   : > { %v657_v47 = vmul.f32 %v3910_v42, %v615_v61  ;;  %v683_v50 = vsel %vm667_vm5, %v4098_v52, 0.0  ;;  %v706_v54 = vmul.f32 %v4098_v52, %v4098_v52  ;;  %v597_v39 = vadd.f32 %v589_v34, %v577_v37  ;;  %3298 = vmatpush3.msra.mxu0 %v821_v56 }
  0x54   : > { %v701_v36 = vmul.f32 %v4085_v53, %v4085_v53  ;;  %v668_v12 = vsel %vm667_vm5, %v4085_v53, 0.0  ;;  %v658_v15 = vmul.f32 %v3910_v42, %v646_v24  ;;  %v721_v43 = vsel %vm667_vm5, %v705_v40, 0.0  ;;  %3299 = vmatprep.subr.mxu0 %v820_v29 }
  0x55   : > { %669 = vadd.xlane.f32.xlu0 %v668_v12  ;;  %v4112_v32 = vadd.f32 %v657_v47, %v596_v46  ;;  %v724_v55 = vsel %vm667_vm5, %v706_v54, 0.0  ;;  %3300 = vmatpush3.msra.mxu0 %v820_v29 }
  0x56   : > { %v709_v41 = vsel %vm667_vm5, %v701_v36, 0.0  ;;  %v4115_v16 = vadd.f32 %v658_v15, %v597_v39  ;;  %3301 = vmatprep.subr.mxu0 %v819_v0 }
  0x57   : > { %710 = vadd.xlane.f32.xlu1 %v709_v41  ;;  %v686_v57 = vsel %vm667_vm5, %v4112_v32, 0.0  ;;  %v707_v58 = vmul.f32 %v4112_v32, %v4112_v32  ;;  %3302 = vmatpush3.msra.mxu0 %v819_v0 }
  0x58   : > { %v689_v42 = vsel %vm667_vm5, %v4115_v16, 0.0  ;;  %v708_v60 = vmul.f32 %v4115_v16, %v4115_v16 }
  0x59   : > { %716 = vadd.xlane.f32.xlu0 %v715_v45  ;;  %v727_v62 = vsel %vm667_vm5, %v707_v58, 0.0 }
  0x5a   : > { %v730_v38 = vsel %vm667_vm5, %v708_v60, 0.0 }
  0x5b   : > { %684 = vadd.xlane.f32.xlu1 %v683_v50 }
  0x5d   : > { %722 = vadd.xlane.f32.xlu0 %v721_v43 }
  0x5f   : > { %725 = vadd.xlane.f32.xlu1 %v724_v55 }
  0x61   : > { %687 = vadd.xlane.f32.xlu0 %v686_v57 }
  0x63   : > { %690 = vadd.xlane.f32.xlu1 %v689_v42 }
  0x65   : > { %728 = vadd.xlane.f32.xlu0 %v727_v62 }
  0x67   : > { %731 = vadd.xlane.f32.xlu1 %v730_v38 }
  0xc9   : > { %v679_v9 = vpop.xlane.xlu1 %678 }
  0xca   : > { %v4139_v18 = vmul.f32 0.03125, %v679_v9 }
  0xcc   : > { %v744_v23 = vmul.f32 %v4139_v18, %v4139_v18 }
  0xcd   : > { %v720_v14 = vpop.xlane.xlu1 %719 }
  0xce   : > { %v676_v11 = vpop.xlane.xlu0 %675  ;;  %v736_v25 = vmul.f32 0.03125, %v720_v14 }
  0xcf   : > { %v4143_v33 = vmul.f32 0.03125, %v676_v11 }
  0xd0   : > { %v752_v35 = vsub.f32 %v736_v25, %v744_v23 }
  0xd1   : > { %v743_v24 = vmul.f32 %v4143_v33, %v4143_v33 }
  0xd2   : > { %v682_v13 = vpop.xlane.xlu0 %681  ;;  %v768_v37 = vadd.f32 1e-06, %v752_v35 }
  0xd3   : > { %v4147_v46 = vmul.f32 0.03125, %v682_v13 }
  0xd5   : > { %v745_v57 = vmul.f32 %v4147_v46, %v4147_v46 }
  0xd8   : > { %v673_v21 = vpop.xlane.xlu0 %672 }
  0xd9   : > { %v694_v51 = vmul.f32 0.03125, %v673_v21 }
  0xda   : > { %v714_v22 = vpop.xlane.xlu1 %713 }
  0xdb   : > { %v734_v26 = vmul.f32 0.03125, %v714_v22  ;;  %v742_v27 = vmul.f32 %v694_v51, %v694_v51  ;;  %v758_v25 = vsub.f32 %v4054_v59, %v694_v51  ;;  %v3088_v59 = vld [vmem:[%s4540_s3] ss:$0 sm:$0xff] }
  0xdd   : > { %v750_v28 = vsub.f32 %v734_v26, %v742_v27 }
  0xde   : > { %v670_v19 = vpop.xlane.xlu0 %669 }
  0xdf   : > { %v766_v30 = vadd.f32 1e-06, %v750_v28  ;;  %v693_v34 = vmul.f32 0.03125, %v670_v19 }
  0xe0   : > { %v711_v61 = vpop.xlane.xlu1 %710 }
  0xe1   : > { %v733_v36 = vmul.f32 0.03125, %v711_v61  ;;  %v741_v12 = vmul.f32 %v693_v34, %v693_v34  ;;  %3574 = vrsqrt.f32 %v766_v30  ;;  %v757_v19 = vsub.f32 %v4085_v53, %v693_v34 }
  0xe2   : > { %v717_v40 = vpop.xlane.xlu0 %716  ;;  %3576 = vrsqrt.f32 %v768_v37  ;;  %v760_v37 = vsub.f32 %v3982_v44, %v4139_v18  ;;  %v3089_v44 = vld [vmem:[%s4541_s4] ss:$0 sm:$0xff] }
  0xe3   : > { %v749_v41 = vsub.f32 %v733_v36, %v741_v12  ;;  %v735_v45 = vmul.f32 0.03125, %v717_v40  ;;  %v759_v40 = vsub.f32 %v4007_v20, %v4143_v33  ;;  %v761_v20 = vsub.f32 %v4013_v10, %v4147_v46 }
  0xe4   : > { %v685_v47 = vpop.xlane.xlu1 %684 }
  0xe5   : > { %v765_v50 = vadd.f32 1e-06, %v749_v41  ;;  %v4149_v54 = vmul.f32 0.03125, %v685_v47  ;;  %v751_v39 = vsub.f32 %v735_v45, %v743_v24 }
  0xe6   : > { %v723_v15 = vpop.xlane.xlu0 %722 }
  0xe7   : > { %3578 = vrsqrt.f32 %v765_v50  ;;  %v746_v43 = vmul.f32 %v4149_v54, %v4149_v54  ;;  %v767_v55 = vadd.f32 1e-06, %v751_v39  ;;  %v737_v42 = vmul.f32 0.03125, %v723_v15 }
  0xe8   : > { %v726_v58 = vpop.xlane.xlu1 %725 }
  0xe9   : > { %3580 = vrsqrt.f32 %v767_v55  ;;  %v738_v60 = vmul.f32 0.03125, %v726_v58  ;;  %v753_v62 = vsub.f32 %v737_v42, %v745_v57 }
  0xea   : > { %v688_v38 = vpop.xlane.xlu0 %687 }
  0xeb   : > { %v754_v63 = vsub.f32 %v738_v60, %v746_v43  ;;  %v699_v56 = vmul.f32 0.03125, %v688_v38  ;;  %v769_v29 = vadd.f32 1e-06, %v753_v62  ;;  %v762_v43 = vsub.f32 %v4098_v52, %v4149_v54 }
  0xec   : > { %v691_v0 = vpop.xlane.xlu1 %690 }
  0xed   : > { %v770_v9 = vadd.f32 1e-06, %v754_v63  ;;  %v700_v11 = vmul.f32 0.03125, %v691_v0  ;;  %3582 = vrsqrt.f32 %v769_v29  ;;  %v747_v22 = vmul.f32 %v699_v56, %v699_v56 }
  0xee   : > { %v729_v13 = vpop.xlane.xlu0 %728  ;;  %v3575_v14 = vpop.eup %3574  ;;  %v763_v46 = vsub.f32 %v4112_v32, %v699_v56  ;;  %v3697_v32 = vmov 0.0   ;;  %v1213_v56 = vld [vmem:[#allocation3 + $0x58] sm:$0xff] }
  0xef   : > { %3584 = vrsqrt.f32 %v770_v9  ;;  %v748_v21 = vmul.f32 %v700_v11, %v700_v11  ;;  %v739_v23 = vmul.f32 0.03125, %v729_v13  ;;  %v782_v35 = vmul.f32 %v3575_v14, %v758_v25  ;;  %v3577_v30 = vpop.eup %3576  ;;  %347 = vst.msk [vmem:[#allocation2] sm:$0x3] %vm346_vm9, %v3697_v32  ;;  %975 = vst.msk [vmem:[#allocation2 + $0x42] sm:$0x3] %vm346_vm9, %v3697_v32  ;;  %3343 = vmatprep.subr.mxu0 %v1213_v56  ;;  %v978_v25 = vld [vmem:[#allocation3 + $0x8] sm:$0xff] }
  0xf0   : > { %v732_v26 = vpop.xlane.xlu1 %731  ;;  %v784_v47 = vmul.f32 %v3577_v30, %v760_v37  ;;  %v764_v54 = vsub.f32 %v4115_v16, %v700_v11  ;;  %v980_v16 = vld [vmem:[#allocation3 + $0x18] sm:$0xff]  ;;  %v979_v11 = vld [vmem:[#allocation3 + $0x10] sm:$0xff] }
  0xf1   : > { %v740_v27 = vmul.f32 0.03125, %v732_v26  ;;  %v755_v28 = vsub.f32 %v739_v23, %v747_v22  ;;  %v797_v45 = vmul.f32 %v3088_v59, %v782_v35  ;;  %3315 = vmatprep.subr.mxu1 %v980_v16  ;;  %v1212_v23 = vld [vmem:[#allocation3 + $0x50] sm:$0xff]  ;;  %v1211_v26 = vld [vmem:[#allocation3 + $0x48] sm:$0xff]  ;;  %v1099_v35 = vld [vmem:[#allocation3 + $0x38] sm:$0xff] }
  0xf2   : > { %v799_v39 = vmul.f32 %v3088_v59, %v784_v47  ;;  %3316 = vmatpush3.msra.mxu1 %v980_v16  ;;  %v1441_v30 = vld [vmem:[#allocation3 + $0x98] sm:$0xff] }
  0xf3   : > { %v756_v61 = vsub.f32 %v740_v27, %v748_v21  ;;  %v771_v36 = vadd.f32 1e-06, %v755_v28  ;;  %v812_v33 = vadd.f32 %v3089_v44, %v797_v45  ;;  %3317 = vmatprep.subr.mxu1 %v979_v11  ;;  %v977_v27 = vld [vmem:[#allocation3] sm:$0xff] }
  0xf4   : > { %v3579_v12 = vpop.eup %3578  ;;  %v814_v60 = vadd.f32 %v3089_v44, %v799_v39  ;;  %3318 = vmatpush3.msra.mxu1 %v979_v11  ;;  %v1210_v28 = vld [vmem:[#allocation3 + $0x40] sm:$0xff] }
  0xf5   : > { %v781_v51 = vmul.f32 %v3579_v12, %v757_v19  ;;  %v772_v24 = vadd.f32 1e-06, %v756_v61  ;;  %3586 = vrsqrt.f32 %v771_v36  ;;  %3319 = vmatprep.subr.mxu1 %v978_v25  ;;  %v3090_v19 = vld [vmem:[%s4543_s6] ss:$0 sm:$0xff] }
  0xf6   : > { %v3581_v41 = vpop.eup %3580  ;;  %3320 = vmatpush3.msra.mxu1 %v978_v25 }
  0xf7   : > { %3588 = vrsqrt.f32 %v772_v24  ;;  %v796_v53 = vmul.f32 %v3088_v59, %v781_v51  ;;  %v783_v34 = vmul.f32 %v3581_v41, %v759_v40  ;;  %3321 = vmatprep.subr.mxu1 %v977_v27 }
  0xf8   : > { %3322 = vmatpush3.msra.mxu1 %v977_v27 }
  0xf9   : > { %v811_v18 = vadd.f32 %v3089_v44, %v796_v53  ;;  %v798_v50 = vmul.f32 %v3088_v59, %v783_v34  ;;  %3329 = vmatprep.subr.mxu1 %v1099_v35 }
  0xfa   : > { %v3583_v15 = vpop.eup %3582 }
  0xfb   : > { %3303 = vmatprep.mubr.msk.f32.mxu0 %vm667_vm5, %v811_v18  ;;  %v813_v55 = vadd.f32 %v3089_v44, %v798_v50  ;;  %v785_v58 = vmul.f32 %v3583_v15, %v761_v20  ;;  %v1098_v15 = vld [vmem:[#allocation3 + $0x30] sm:$0xff] }
  0xfc   : > { %v3585_v57 = vpop.eup %3584  ;;  %3304 = vmatmul.mubr.msk.f32.vlgmr.msra.gmra.mxu0 %vm667_vm5, %v812_v33 }
  0xfd   : > { %3306 = vmatprep.mubr.msk.f32.mxu0 %vm667_vm5, %v813_v55  ;;  %v786_v42 = vmul.f32 %v3585_v57, %v762_v43  ;;  %v800_v62 = vmul.f32 %v3088_v59, %v785_v58  ;;  %3344 = vmatpush3.msra.mxu0 %v1213_v56  ;;  %v1440_v58 = vld [vmem:[#allocation3 + $0x90] sm:$0xff]  ;;  %v1324_v56 = vld [vmem:[#allocation3 + $0x60] sm:$0xff] }
  0xfe   : > { %3345 = vmatprep.subr.mxu0 %v1212_v23 }
  0xff   : > { %v801_v38 = vmul.f32 %v3088_v59, %v786_v42  ;;  %v815_v10 = vadd.f32 %v3089_v44, %v800_v62  ;;  %3346 = vmatpush3.msra.mxu0 %v1212_v23  ;;  %v1097_v42 = vld [vmem:[#allocation3 + $0x28] sm:$0xff]  ;;  %v1096_v62 = vld [vmem:[#allocation3 + $0x20] sm:$0xff] }
 0x100   : > { %3307 = vmatmul.mubr.msk.f32.gmra.mxu0 %vm667_vm5, %v814_v60  ;;  %3347 = vmatprep.subr.mxu0 %v1211_v26  ;;  %v1439_v60 = vld [vmem:[#allocation3 + $0x88] sm:$0xff] }
 0x101   : > { %3309 = vmatprep.mubr.msk.f32.mxu0 %vm667_vm5, %v815_v10  ;;  %v816_v52 = vadd.f32 %v3089_v44, %v801_v38  ;;  %3348 = vmatpush3.msra.mxu0 %v1211_v26  ;;  %v1438_v10 = vld [vmem:[#allocation3 + $0x80] sm:$0xff] }
 0x102   : > { %v3587_v63 = vpop.eup %3586  ;;  %3349 = vmatprep.subr.mxu0 %v1210_v28 }
 0x103   : > { %v787_v29 = vmul.f32 %v3587_v63, %v763_v46  ;;  %3350 = vmatpush3.msra.mxu0 %v1210_v28 }
 0x104   : > { %v3589_v0 = vpop.eup %3588  ;;  %3310 = vmatmul.mubr.msk.f32.gmra.mxu0 %vm667_vm5, %v816_v52  ;;  %3371 = vmatprep.subr.mxu0 %v1441_v30  ;;  %v1327_v52 = vld [vmem:[#allocation3 + $0x78] sm:$0xff] }
 0x105   : > { %v802_v9 = vmul.f32 %v3088_v59, %v787_v29  ;;  %v788_v13 = vmul.f32 %v3589_v0, %v764_v54 }
 0x107   : > { %v817_v14 = vadd.f32 %v3089_v44, %v802_v9  ;;  %v803_v21 = vmul.f32 %v3088_v59, %v788_v13 }
 0x109   : > { %3312 = vmatprep.mubr.msk.f32.mxu0 %vm667_vm5, %v817_v14  ;;  %v818_v22 = vadd.f32 %v3089_v44, %v803_v21  ;;  %v1326_v14 = vld [vmem:[#allocation3 + $0x70] sm:$0xff] }
 0x10b   : > { %3313 = vmatmul.mubr.msk.f32.gmra.mxu0 %vm667_vm5, %v818_v22  ;;  %v1325_v22 = vld [vmem:[#allocation3 + $0x68] sm:$0xff] }
 0x1bc   : > { %v3305_v61 = vpop.f32.mrf.mxu0 }
 0x1bd   : > { %v926_v36 = vadd.f32 %v3305_v61, %v3090_v19 }
 0x1be   : > { %v920_v12 = vpop.f32.mrf.mxu0 }
 0x1bf   : > { %v960_v37 = vadd.f32 %v926_v36, %v3832_v4  ;;  %v921_v40 = vadd.f32 %v3090_v19, %v920_v12  ;;  %v3103_v36 = vld [vmem:[%s4545_s8] ss:$0 sm:$0xff] }
 0x1c0   : > { %v3308_v59 = vpop.f32.mrf.mxu0 }
 0x1c1   : > { %968 = vst.msk [vmem:[#allocation2 + $0xa] sm:$0xff] %vm667_vm5, %v960_v37  ;;  %v959_v51 = vadd.f32 %v921_v40, %v3891_v31  ;;  %v936_v24 = vadd.f32 %v3308_v59, %v3090_v19 }
 0x1c2   : > { %v930_v41 = vpop.f32.mrf.mxu0 }
 0x1c3   : > { %967 = vst.msk [vmem:[#allocation2 + $0x2] sm:$0xff] %vm667_vm5, %v959_v51  ;;  %v962_v45 = vadd.f32 %v936_v24, %v3838_v6  ;;  %v931_v47 = vadd.f32 %v3090_v19, %v930_v41 }
 0x1c4   : > { %v3311_v53 = vpop.f32.mrf.mxu0 }
 0x1c5   : > { %970 = vst.msk [vmem:[#allocation2 + $0x1a] sm:$0xff] %vm667_vm5, %v962_v45  ;;  %v961_v34 = vadd.f32 %v931_v47, %v3835_v5  ;;  %v946_v44 = vadd.f32 %v3311_v53, %v3090_v19 }
 0x1c6   : > { %v940_v4 = vpop.f32.mrf.mxu0 }
 0x1c7   : > { %969 = vst.msk [vmem:[#allocation2 + $0x12] sm:$0xff] %vm667_vm5, %v961_v34  ;;  %v964_v18 = vadd.f32 %v946_v44, %v3865_v17  ;;  %v941_v50 = vadd.f32 %v3090_v19, %v940_v4 }
 0x1c9   : > { %972 = vst.msk [vmem:[#allocation2 + $0x2a] sm:$0xff] %vm667_vm5, %v964_v18  ;;  %v963_v31 = vadd.f32 %v941_v50, %v3846_v8 }
 0x1ca   : > { %v981_v20 = vld [vmem:[#allocation2] ss:$2 sm:$0xff]  ;;  %v1101_v0 = vld [vmem:[#allocation2 + $0x1] ss:$2 sm:$0xff] }
 0x1cb   : > { %v1215_v33 = vld [vmem:[#allocation2 + $0x2] ss:$2 sm:$0xff]  ;;  %971 = vst.msk [vmem:[#allocation2 + $0x22] sm:$0xff] %vm667_vm5, %v963_v31  ;;  %v3314_v6 = vpop.f32.mrf.mxu0  ;;  %3323 = vmatprep.mubr.msk.f32.mxu1 %vm667_vm5, %v981_v20  ;;  %v1329_v23 = vld [vmem:[#allocation2 + $0x3] ss:$2 sm:$0xff] }
 0x1cc   : > { %3351 = vmatprep.mubr.msk.f32.mxu0 %vm667_vm5, %v1215_v33  ;;  %v956_v5 = vadd.f32 %v3314_v6, %v3090_v19 }
 0x1cd   : > { %v950_v39 = vpop.f32.mrf.mxu0 }
 0x1ce   : > { %v966_v43 = vadd.f32 %v956_v5, %v3922_v49  ;;  %v951_v17 = vadd.f32 %v3090_v19, %v950_v39  ;;  %v983_v55 = vld [vmem:[#allocation2 + $0x10] ss:$2 sm:$0xff]  ;;  %v1103_v13 = vld [vmem:[#allocation2 + $0x11] ss:$2 sm:$0xff] }
 0x1cf   : > { %v1217_v57 = vld [vmem:[#allocation2 + $0x12] ss:$2 sm:$0xff]  ;;  %3324 = vmatmul.mubr.msk.f32.vlgmr.msra.gmra.mxu1 %vm667_vm5, %v983_v55  ;;  %v1331_v25 = vld [vmem:[#allocation2 + $0x13] ss:$2 sm:$0xff] }
 0x1d0   : > { %3352 = vmatmul.mubr.msk.f32.vlgmr.msra.gmra.mxu0 %vm667_vm5, %v1217_v57  ;;  %974 = vst.msk [vmem:[#allocation2 + $0x3a] sm:$0xff] %vm667_vm5, %v966_v43  ;;  %v965_v8 = vadd.f32 %v951_v17, %v3919_v48  ;;  %3330 = vmatpush3.msra.mxu1 %v1099_v35  ;;  %v1443_v9 = vld [vmem:[#allocation2 + $0x4] ss:$2 sm:$0xff] }
 0x1d1   : > { %3372 = vmatpush3.msra.mxu0 %v1441_v30  ;;  %3331 = vmatprep.subr.mxu1 %v1098_v15  ;;  %v3120_v43 = vld [vmem:[%s4538_s1 + $0x4] sm:$0x7] }
 0x1d2   : > { %3373 = vmatprep.subr.mxu0 %v1440_v58  ;;  %973 = vst.msk [vmem:[#allocation2 + $0x32] sm:$0xff] %vm667_vm5, %v965_v8  ;;  %v985_v49 = vld [vmem:[#allocation2 + $0x20] ss:$2 sm:$0xff]  ;;  %3332 = vmatpush3.msra.mxu1 %v1098_v15  ;;  %v1105_v48 = vld [vmem:[#allocation2 + $0x21] ss:$2 sm:$0xff] }
 0x1d3   : > { %v1219_v38 = vld [vmem:[#allocation2 + $0x22] ss:$2 sm:$0xff]  ;;  %3374 = vmatpush3.msra.mxu0 %v1440_v58  ;;  %3326 = vmatprep.mubr.msk.f32.mxu1 %vm667_vm5, %v985_v49  ;;  %v1333_v63 = vld [vmem:[#allocation2 + $0x23] ss:$2 sm:$0xff] }
 0x1d4   : > { %3354 = vmatprep.mubr.msk.f32.mxu0 %vm667_vm5, %v1219_v38  ;;  %v1445_v46 = vld [vmem:[#allocation2 + $0x14] ss:$2 sm:$0xff]  ;;  %3333 = vmatprep.subr.mxu1 %v1097_v42 }
 0x1d5   : > { %3375 = vmatprep.subr.mxu0 %v1439_v60  ;;  %1893 = vst.msk [vmem:[#allocation2 + $0x22] sm:$0x3] %vm346_vm9, %v3697_v32  ;;  %3334 = vmatpush3.msra.mxu1 %v1097_v42 }
 0x1d6   : > { %3376 = vmatpush3.msra.mxu0 %v1439_v60  ;;  %3335 = vmatprep.subr.mxu1 %v1096_v62  ;;  %v1576_v60 = vrot.slane %v3120_v43, %v3829_v3 }
 0x1d7   : > { %3377 = vmatprep.subr.mxu0 %v1438_v10  ;;  %3336 = vmatpush3.msra.mxu1 %v1096_v62  ;;  %v4238_v62 = vadd.s32 24, %v3818_v1 }
 0x1d8   : > { %3378 = vmatpush3.msra.mxu0 %v1438_v10  ;;  %3357 = vmatprep.subr.mxu1 %v1327_v52 }
 0x1d9   : > { %v987_v54 = vld [vmem:[#allocation2 + $0x30] ss:$2 sm:$0xff]  ;;  %v1107_v16 = vld [vmem:[#allocation2 + $0x31] ss:$2 sm:$0xff]  ;;  %vm1588_vm10 = vcmp.lt.s32.totalorder %v4238_v62, 31  ;;  %vm1658_vm11 = vcmp.lt.s32.totalorder %v4238_v62, 29 }
 0x1da   : > { %v1221_v29 = vld [vmem:[#allocation2 + $0x32] ss:$2 sm:$0xff]  ;;  %3327 = vmatmul.mubr.msk.f32.gmra.mxu1 %vm667_vm5, %v987_v54  ;;  %v1335_v26 = vld [vmem:[#allocation2 + $0x33] ss:$2 sm:$0xff]  ;;  %v1568_v54 = vrot.slane %v3120_v43, %v3826_v2 }
 0x1db   : > { %3355 = vmatmul.mubr.msk.f32.gmra.mxu0 %vm667_vm5, %v1221_v29  ;;  %3337 = vmatprep.mubr.msk.f32.mxu1 %vm667_vm5, %v1101_v0  ;;  %v1447_v21 = vld [vmem:[#allocation2 + $0x24] ss:$2 sm:$0xff]  ;;  %v1449_v11 = vld [vmem:[#allocation2 + $0x34] ss:$2 sm:$0xff] }
 0x1dc   : > { %3379 = vmatprep.mubr.msk.f32.mxu0 %vm667_vm5, %v1443_v9  ;;  %v1612_v9 = vrot.slane %v3120_v43, %v3843_v7 }
 0x1de   : > { %3338 = vmatmul.mubr.msk.f32.vlgmr.msra.gmra.mxu1 %vm667_vm5, %v1103_v13 }
 0x1df   : > { %3380 = vmatmul.mubr.msk.f32.vlgmr.msra.gmra.mxu0 %vm667_vm5, %v1445_v46  ;;  %3358 = vmatpush3.msra.mxu1 %v1327_v52 }
 0x1e0   : > { %3340 = vmatprep.mubr.msk.f32.mxu1 %vm667_vm5, %v1105_v48  ;;  %3359 = vmatprep.subr.mxu1 %v1326_v14 }
 0x1e1   : > { %3382 = vmatprep.mubr.msk.f32.mxu0 %vm667_vm5, %v1447_v21  ;;  %3360 = vmatpush3.msra.mxu1 %v1326_v14 }
 0x1e2   : > { %3361 = vmatprep.subr.mxu1 %v1325_v22  ;;  %3341 = vmatmul.mubr.msk.f32.gmra.mxu1 %vm667_vm5, %v1107_v16 }
 0x1e3   : > { %3362 = vmatpush3.msra.mxu1 %v1325_v22  ;;  %3383 = vmatmul.mubr.msk.f32.gmra.mxu0 %vm667_vm5, %v1449_v11 }
 0x1e4   : > { %3363 = vmatprep.subr.mxu1 %v1324_v56  ;;  %3365 = vmatprep.mubr.msk.f32.mxu1 %vm667_vm5, %v1329_v23 }
 0x1e5   : > { %3364 = vmatpush3.msra.mxu1 %v1324_v56 }
 0x1e6   : > { %3366 = vmatmul.mubr.msk.f32.vlgmr.msra.gmra.mxu1 %vm667_vm5, %v1331_v25 }
 0x1e7   : > { %3368 = vmatprep.mubr.msk.f32.mxu1 %vm667_vm5, %v1333_v63 }
 0x1ea   : > { %3369 = vmatmul.mubr.msk.f32.gmra.mxu1 %vm667_vm5, %v1335_v26 }
 0x28f   : > { %v3325_v27 = vpop.f32.mrf.mxu1 }
 0x290   : > { %v3353_v28 = vpop.f32.mrf.mxu0  ;;  %v1092_v59 = vadd.f32 %v3325_v27, %v3103_v36 }
 0x291   : > { %v1066_v35 = vpop.f32.mrf.mxu1 }
 0x292   : > { %v1300_v30 = vpop.f32.mrf.mxu0  ;;  %v1091_v24 = vadd.f32 %v3103_v36, %v1066_v35 }
 0x29a   : > { %v3328_v19 = vpop.f32.mrf.mxu1 }
 0x29b   : > { %v3356_v61 = vpop.f32.mrf.mxu0  ;;  %v1094_v34 = vadd.f32 %v3328_v19, %v3103_v36 }
 0x29c   : > { %v1076_v12 = vpop.f32.mrf.mxu1 }
 0x29d   : > { %v1310_v37 = vpop.f32.mrf.mxu0  ;;  %v1093_v4 = vadd.f32 %v3103_v36, %v1076_v12 }
 0x29e   : > { %v3339_v40 = vpop.f32.mrf.mxu1 }
 0x29f   : > { %v1206_v41 = vadd.f32 %v3339_v40, %v1092_v59  ;;  %v3381_v45 = vpop.f32.mrf.mxu0 }
 0x2a0   : > { %v1186_v51 = vpop.f32.mrf.mxu1 }
 0x2a1   : > { %v1205_v53 = vadd.f32 %v1186_v51, %v1091_v24  ;;  %v1320_v18 = vadd.f32 %v3353_v28, %v1206_v41  ;;  %v1528_v50 = vpop.f32.mrf.mxu0 }
 0x2a2   : > { %v3342_v47 = vpop.f32.mrf.mxu1 }
 0x2a3   : > { %v1208_v31 = vadd.f32 %v3342_v47, %v1094_v34  ;;  %v1319_v5 = vadd.f32 %v1300_v30, %v1205_v53  ;;  %v3384_v55 = vpop.f32.mrf.mxu0  ;;  %v3121_v47 = vld [vmem:[%s4539_s2 + $0x4] sm:$0x7] }
 0x2a4   : > { %v1196_v44 = vpop.f32.mrf.mxu1  ;;  %v1682_v43 = vrot.slane %v3121_v47, %v3843_v7 }
 0x2a5   : > { %v1207_v33 = vadd.f32 %v1196_v44, %v1093_v4  ;;  %v1322_v57 = vadd.f32 %v3356_v61, %v1208_v31  ;;  %v1538_v52 = vpop.f32.mrf.mxu0 }
 0x2a6   : > { %v3367_v20 = vpop.f32.mrf.mxu1 }
 0x2a7   : > { %v1434_v6 = vadd.f32 %v3367_v20, %v1320_v18  ;;  %v1321_v42 = vadd.f32 %v1310_v37, %v1207_v33  ;;  %v1646_v33 = vrot.slane %v3121_v47, %v3829_v3 }
 0x2a8   : > { %v1414_v39 = vpop.f32.mrf.mxu1 }
 0x2a9   : > { %v4229_v15 = vadd.f32 %v3381_v45, %v1434_v6  ;;  %v1433_v17 = vadd.f32 %v1414_v39, %v1319_v5  ;;  %v1638_v39 = vrot.slane %v3121_v47, %v3826_v2 }
 0x2aa   : > { %v3370_v58 = vpop.f32.mrf.mxu1 }
 0x2ab   : > { %v4234_v8 = vadd.f32 %v1528_v50, %v1433_v17  ;;  %v1436_v49 = vadd.f32 %v3370_v58, %v1322_v57  ;;  %v1554_v10 = vrot.slane %v4229_v15, 7  ;;  %v1590_v0 = vrot.slane %v4229_v15, 1 }
 0x2ac   : > { %v1424_v38 = vpop.f32.mrf.mxu1  ;;  %v1578_v21 = vmul.f32 %v1576_v60, %v4229_v15 }
 0x2ad   : > { %v1553_v46 = vrot.slane %v4234_v8, 7  ;;  %v1589_v48 = vrot.slane %v4234_v8, 1  ;;  %v1435_v63 = vadd.f32 %v1424_v38, %v1321_v42  ;;  %v4244_v29 = vadd.f32 %v3384_v55, %v1436_v49 }
 0x2ae   : > { %v1577_v22 = vmul.f32 %v1576_v60, %v4234_v8 }
 0x2af   : > { %v1559_v13 = vsel %vm382_vm0, %v1553_v46, %v1554_v10  ;;  %v4250_v14 = vadd.f32 %v1538_v52, %v1435_v63  ;;  %v1556_v16 = vrot.slane %v4244_v29, 7  ;;  %v1595_v56 = vsel %vm463_vm1, %v1589_v48, %v1590_v0 }
 0x2b0   : > { %v1592_v11 = vrot.slane %v4244_v29, 1  ;;  %v1570_v26 = vmul.f32 %v1568_v54, %v1559_v13  ;;  %v1580_v28 = vmul.f32 %v1576_v60, %v4244_v29  ;;  %v1613_v51 = vmul.f32 %v1612_v9, %v1595_v56 }
 0x2b1   : > { %v1555_v23 = vrot.slane %v4250_v14, 7  ;;  %v1591_v25 = vrot.slane %v4250_v14, 1  ;;  %v1560_v27 = vsel %vm382_vm0, %v1556_v16, %v1553_v46  ;;  %v1579_v35 = vmul.f32 %v1576_v60, %v4250_v14 }
 0x2b2   : > { %v1561_v30 = vsel %vm366_vm4, %v1560_v27, 0.0  ;;  %v1596_v19 = vsel %vm463_vm1, %v1592_v11, %v1589_v48  ;;  %v1582_v18 = vadd.f32 %v1578_v21, %v1570_v26 }
 0x2b3   : > { %v1557_v61 = vsel %vm382_vm0, %v1555_v23, %v1556_v16  ;;  %v1558_v36 = vsel %vm382_vm0, %v1554_v10, %v1555_v23  ;;  %v1569_v12 = vmul.f32 %v1568_v54, %v1561_v30  ;;  %v1608_v37 = vsel %vm1588_vm10, %v1596_v19, 0.0 }
 0x2b4   : > { %v1571_v40 = vmul.f32 %v1568_v54, %v1558_v36  ;;  %v1572_v59 = vmul.f32 %v1568_v54, %v1557_v61  ;;  %v1616_v24 = vmul.f32 %v1612_v9, %v1608_v37  ;;  %v1593_v41 = vsel %vm463_vm1, %v1591_v25, %v1592_v11 }
 0x2b5   : > { %v1594_v45 = vsel %vm463_vm1, %v1590_v0, %v1591_v25  ;;  %v1581_v53 = vadd.f32 %v1577_v22, %v1569_v12  ;;  %v1615_v4 = vmul.f32 %v1612_v9, %v1593_v41 }
 0x2b6   : > { %v1583_v34 = vadd.f32 %v1579_v35, %v1571_v40  ;;  %v1584_v44 = vadd.f32 %v1580_v28, %v1572_v59  ;;  %v1614_v50 = vmul.f32 %v1612_v9, %v1594_v45 }
 0x2b7   : > { %v1617_v20 = vadd.f32 %v1613_v51, %v1581_v53 }
 0x2b8   : > { %v1619_v31 = vadd.f32 %v1615_v4, %v1583_v34  ;;  %v1620_v6 = vadd.f32 %v1616_v24, %v1584_v44  ;;  %v1618_v5 = vadd.f32 %v1614_v50, %v1582_v18 }
 0x2b9   : > { %v1623_v17 = vrot.slane %v1617_v20, 5  ;;  %v1659_v48 = vrot.slane %v1617_v20, 3  ;;  %v1647_v19 = vmul.f32 %v1646_v33, %v1617_v20 }
 0x2ba   : > { %v1661_v55 = vrot.slane %v1619_v31, 3  ;;  %v1625_v57 = vrot.slane %v1619_v31, 5  ;;  %v1624_v58 = vrot.slane %v1618_v5, 5  ;;  %v1660_v42 = vrot.slane %v1618_v5, 3 }
 0x2bb   : > { %v1649_v60 = vmul.f32 %v1646_v33, %v1619_v31  ;;  %v1662_v49 = vrot.slane %v1620_v6, 3  ;;  %v1648_v38 = vmul.f32 %v1646_v33, %v1618_v5  ;;  %v1626_v10 = vrot.slane %v1620_v6, 5  ;;  %v3127_v5 = vld [vmem:[%s4542_s5 + $0x28] sm:$0xff] }
 0x2bc   : > { %v1650_v46 = vmul.f32 %v1646_v33, %v1620_v6  ;;  %v1629_v63 = vsel %vm533_vm2, %v1623_v17, %v1624_v58  ;;  %v1664_v52 = vsel %vm614_vm3, %v1660_v42, %v1661_v55  ;;  %v1628_v54 = vsel %vm533_vm2, %v1624_v58, %v1625_v57  ;;  %v3129_v33 = vld [vmem:[%s4542_s5 + $0x38] sm:$0xff]  ;;  %v3128_v6 = vld [vmem:[%s4542_s5 + $0x30] sm:$0xff] }
 0x2bd   : > { %v1663_v0 = vsel %vm614_vm3, %v1661_v55, %v1662_v49  ;;  %v1640_v9 = vmul.f32 %v1638_v39, %v1629_v63  ;;  %v1684_v13 = vmul.f32 %v1682_v43, %v1664_v52  ;;  %v1641_v21 = vmul.f32 %v1638_v39, %v1628_v54  ;;  %3385 = vmatprep.subr.mxu1 %v3129_v33 }
 0x2be   : > { %v1685_v22 = vmul.f32 %v1682_v43, %v1663_v0  ;;  %v1627_v16 = vsel %vm533_vm2, %v1625_v57, %v1626_v10  ;;  %v1666_v56 = vsel %vm614_vm3, %v1662_v49, %v1659_v48  ;;  %v1630_v11 = vsel %vm533_vm2, %v1626_v10, %v1623_v17  ;;  %3386 = vmatpush3.msra.mxu1 %v3129_v33  ;;  %v1900_v33 = vld [vmem:[#allocation3 + $0xb8] sm:$0xff] }
 0x2bf   : > { %v1665_v23 = vsel %vm614_vm3, %v1659_v48, %v1660_v42  ;;  %v1652_v25 = vadd.f32 %v1648_v38, %v1640_v9  ;;  %v1653_v26 = vadd.f32 %v1649_v60, %v1641_v21  ;;  %v1642_v27 = vmul.f32 %v1638_v39, %v1627_v16  ;;  %3387 = vmatprep.subr.mxu1 %v3128_v6 }
 0x2c0   : > { %v1678_v28 = vsel %vm1658_vm11, %v1666_v56, 0.0  ;;  %v1631_v30 = vsel %vm517_vm7, %v1630_v11, 0.0  ;;  %v1683_v40 = vmul.f32 %v1682_v43, %v1665_v23  ;;  %3388 = vmatpush3.msra.mxu1 %v3128_v6  ;;  %v1899_v6 = vld [vmem:[#allocation3 + $0xb0] sm:$0xff]  ;;  %3399 = vmatprep.subr.mxu0 %v1900_v33 }
 0x2c1   : > { %v1686_v35 = vmul.f32 %v1682_v43, %v1678_v28  ;;  %v4304_v61 = vadd.f32 %v1684_v13, %v1652_v25  ;;  %v4306_v36 = vadd.f32 %v1685_v22, %v1653_v26  ;;  %v1654_v12 = vadd.f32 %v1650_v46, %v1642_v27  ;;  %3389 = vmatprep.subr.mxu1 %v3127_v5 }
 0x2c2   : > { %v1639_v37 = vmul.f32 %v1638_v39, %v1631_v30  ;;  %v3126_v39 = vld [vmem:[%s4542_s5 + $0x20] sm:$0xff]  ;;  %3390 = vmatpush3.msra.mxu1 %v3127_v5  ;;  %v1995_v5 = vld [vmem:[#allocation3 + $0xd0] sm:$0xff]  ;;  %3400 = vmatpush3.msra.mxu0 %v1900_v33 }
 0x2c3   : > { %v1694_v59 = vsel %vm667_vm5, %v4304_v61, 0.0  ;;  %v1697_v51 = vsel %vm667_vm5, %v4306_v36, 0.0  ;;  %v4312_v62 = vadd.f32 %v1686_v35, %v1654_v12  ;;  %v1708_v53 = vmul.f32 %v4304_v61, %v4304_v61  ;;  %3391 = vmatprep.subr.mxu1 %v3126_v39  ;;  %v3123_v12 = vld [vmem:[%s4540_s3 + $0x1] ss:$0 sm:$0xff]  ;;  %3401 = vmatprep.subr.mxu0 %v1899_v6 }
 0x2c4   : > { %v1651_v24 = vadd.f32 %v1647_v19, %v1639_v37  ;;  %1695 = vadd.xlane.f32.xlu1 %v1694_v59  ;;  %1698 = vadd.xlane.f32.xlu0 %v1697_v51  ;;  %v1709_v50 = vmul.f32 %v4306_v36, %v4306_v36 }
 0x2c5   : > { %v1700_v45 = vsel %vm667_vm5, %v4312_v62, 0.0  ;;  %v1714_v44 = vsel %vm667_vm5, %v1708_v53, 0.0  ;;  %v1710_v18 = vmul.f32 %v4312_v62, %v4312_v62  ;;  %3392 = vmatpush3.msra.mxu1 %v3126_v39  ;;  %v1898_v39 = vld [vmem:[#allocation3 + $0xa8] sm:$0xff]  ;;  %3402 = vmatpush3.msra.mxu0 %v1899_v6  ;;  %v358_v6 = vadd.s32 8, %v3818_v1 }
 0x2c6   : > { %v4314_v41 = vadd.f32 %v1683_v40, %v1651_v24  ;;  %v1717_v20 = vsel %vm667_vm5, %v1709_v50, 0.0  ;;  %3403 = vmatprep.subr.mxu0 %v1898_v39 }
 0x2c7   : > { %v1720_v31 = vsel %vm667_vm5, %v1710_v18, 0.0  ;;  %3404 = vmatpush3.msra.mxu0 %v1898_v39  ;;  %vm2375_vm12 = vcmp.lt.s32.totalorder %v358_v6, 15  ;;  %vm2417_vm13 = vcmp.lt.s32.totalorder %v358_v6, 13 }
 0x2c8   : > { %v1691_v47 = vsel %vm667_vm5, %v4314_v41, 0.0  ;;  %v1707_v34 = vmul.f32 %v4314_v41, %v4314_v41  ;;  %1701 = vadd.xlane.f32.xlu1 %v1700_v45  ;;  %v3125_v45 = vld [vmem:[%s4541_s4 + $0x1] ss:$0 sm:$0xff] }
 0x2c9   : > { %1692 = vadd.xlane.f32.xlu0 %v1691_v47 }
 0x2ca   : > { %v1711_v4 = vsel %vm667_vm5, %v1707_v34, 0.0 }
 0x2cc   : > { %1715 = vadd.xlane.f32.xlu1 %v1714_v44 }
 0x2cd   : > { %1712 = vadd.xlane.f32.xlu0 %v1711_v4 }
 0x2d0   : > { %1721 = vadd.xlane.f32.xlu1 %v1720_v31 }
 0x2d1   : > { %1718 = vadd.xlane.f32.xlu0 %v1717_v20 }
 0x34d   : > { %v1696_v43 = vpop.xlane.xlu1 %1695  ;;  %v1699_v17 = vpop.xlane.xlu0 %1698 }
 0x34e   : > { %v1704_v58 = vmul.f32 0.03125, %v1696_v43  ;;  %v1705_v60 = vmul.f32 0.03125, %v1699_v17  ;;  %v1994_v43 = vld [vmem:[#allocation3 + $0xc8] sm:$0xff]  ;;  %v1897_v17 = vld [vmem:[#allocation3 + $0xa0] sm:$0xff] }
 0x34f   : > { %3405 = vmatprep.subr.mxu0 %v1897_v17 }
 0x350   : > { %v1728_v46 = vmul.f32 %v1704_v58, %v1704_v58  ;;  %v1729_v9 = vmul.f32 %v1705_v60, %v1705_v60  ;;  %v1736_v35 = vsub.f32 %v4304_v61, %v1704_v58  ;;  %v1737_v61 = vsub.f32 %v4306_v36, %v1705_v60  ;;  %v1996_v36 = vld [vmem:[#allocation3 + $0xd8] sm:$0xff]  ;;  %3406 = vmatpush3.msra.mxu0 %v1897_v17 }
 0x351   : > { %v1702_v55 = vpop.xlane.xlu1 %1701  ;;  %3410 = vmatprep.subr.mxu1 %v1996_v36  ;;  %v2176_v58 = vld [vmem:[#allocation3 + $0x118] sm:$0xff] }
 0x352   : > { %v1693_v57 = vpop.xlane.xlu0 %1692  ;;  %v1706_v49 = vmul.f32 0.03125, %v1702_v55  ;;  %v1993_v55 = vld [vmem:[#allocation3 + $0xc0] sm:$0xff] }
 0x353   : > { %v1703_v42 = vmul.f32 0.03125, %v1693_v57  ;;  %v2086_v57 = vld [vmem:[#allocation3 + $0xf8] sm:$0xff] }
 0x354   : > { %v1730_v13 = vmul.f32 %v1706_v49, %v1706_v49  ;;  %v1738_v51 = vsub.f32 %v4312_v62, %v1706_v49  ;;  %3421 = vmatprep.subr.mxu0 %v2086_v57 }
 0x355   : > { %v1716_v38 = vpop.xlane.xlu1 %1715  ;;  %v1727_v48 = vmul.f32 %v1703_v42, %v1703_v42  ;;  %v1735_v19 = vsub.f32 %v4314_v41, %v1703_v42  ;;  %v3131_v42 = vld [vmem:[%s4543_s6 + $0x1] ss:$0 sm:$0xff] }
 0x356   : > { %v1713_v10 = vpop.xlane.xlu0 %1712  ;;  %v1724_v63 = vmul.f32 0.03125, %v1716_v38 }
 0x357   : > { %v1723_v52 = vmul.f32 0.03125, %v1713_v10 }
 0x358   : > { %v1732_v54 = vsub.f32 %v1724_v63, %v1728_v46 }
 0x359   : > { %v1731_v0 = vsub.f32 %v1723_v52, %v1727_v48  ;;  %v1722_v21 = vpop.xlane.xlu1 %1721 }
 0x35a   : > { %v1719_v22 = vpop.xlane.xlu0 %1718  ;;  %v1740_v16 = vadd.f32 1e-06, %v1732_v54  ;;  %v1726_v11 = vmul.f32 0.03125, %v1722_v21 }
 0x35b   : > { %v1739_v56 = vadd.f32 1e-06, %v1731_v0  ;;  %v1725_v23 = vmul.f32 0.03125, %v1719_v22 }
 0x35c   : > { %3590 = vrsqrt.f32 %v1740_v16  ;;  %v1734_v25 = vsub.f32 %v1726_v11, %v1730_v13 }
 0x35d   : > { %v1733_v26 = vsub.f32 %v1725_v23, %v1729_v9  ;;  %3592 = vrsqrt.f32 %v1739_v56  ;;  %v2175_v56 = vld [vmem:[#allocation3 + $0x110] sm:$0xff] }
 0x35e   : > { %v1742_v27 = vadd.f32 1e-06, %v1734_v25 }
 0x35f   : > { %v1741_v28 = vadd.f32 1e-06, %v1733_v26  ;;  %v2084_v26 = vld [vmem:[#allocation3 + $0xe8] sm:$0xff] }
 0x360   : > { %3594 = vrsqrt.f32 %v1742_v27  ;;  %v2174_v27 = vld [vmem:[#allocation3 + $0x108] sm:$0xff] }
 0x361   : > { %3596 = vrsqrt.f32 %v1741_v28  ;;  %v2083_v28 = vld [vmem:[#allocation3 + $0xe0] sm:$0xff] }
 0x369   : > { %v3591_v30 = vpop.eup %3590 }
 0x36a   : > { %v3593_v37 = vpop.eup %3592  ;;  %v1748_v40 = vmul.f32 %v3591_v30, %v1736_v35  ;;  %v2173_v35 = vld [vmem:[#allocation3 + $0x100] sm:$0xff]  ;;  %v2266_v30 = vld [vmem:[#allocation3 + $0x138] sm:$0xff] }
 0x36b   : > { %v1747_v59 = vmul.f32 %v3593_v37, %v1735_v19  ;;  %v2265_v19 = vld [vmem:[#allocation3 + $0x130] sm:$0xff]  ;;  %v2263_v37 = vld [vmem:[#allocation3 + $0x120] sm:$0xff] }
 0x36c   : > { %v1760_v24 = vmul.f32 %v3123_v12, %v1748_v40 }
 0x36d   : > { %v3595_v47 = vpop.eup %3594  ;;  %v1759_v53 = vmul.f32 %v3123_v12, %v1747_v59 }
 0x36e   : > { %v3597_v34 = vpop.eup %3596  ;;  %v1750_v41 = vmul.f32 %v3595_v47, %v1738_v51  ;;  %v1772_v18 = vadd.f32 %v3125_v45, %v1760_v24  ;;  %v3139_v51 = vld [vmem:[%s4545_s8 + $0x1] ss:$0 sm:$0xff] }
 0x36f   : > { %v1771_v44 = vadd.f32 %v3125_v45, %v1759_v53  ;;  %v1749_v4 = vmul.f32 %v3597_v34, %v1737_v61 }
 0x370   : > { %v1762_v50 = vmul.f32 %v3123_v12, %v1750_v41 }
 0x371   : > { %3393 = vmatprep.mubr.msk.f32.mxu1 %vm667_vm5, %v1771_v44  ;;  %v1761_v31 = vmul.f32 %v3123_v12, %v1749_v4  ;;  %v2264_v12 = vld [vmem:[#allocation3 + $0x128] sm:$0xff] }
 0x372   : > { %3394 = vmatmul.mubr.msk.f32.vlgmr.msra.gmra.mxu1 %vm667_vm5, %v1772_v18  ;;  %v1774_v20 = vadd.f32 %v3125_v45, %v1762_v50 }
 0x373   : > { %v1773_v62 = vadd.f32 %v3125_v45, %v1761_v31  ;;  %3411 = vmatpush3.msra.mxu1 %v1996_v36  ;;  %v3148_v36 = vld [vmem:[%s4538_s1 + $0x8] sm:$0x7] }
 0x374   : > { %3412 = vmatprep.subr.mxu1 %v1995_v5  ;;  %v2369_v17 = vrot.slane %v3148_v36, %v3829_v3 }
 0x375   : > { %3396 = vmatprep.mubr.msk.f32.mxu1 %vm667_vm5, %v1773_v62  ;;  %3413 = vmatpush3.msra.mxu1 %v1995_v5 }
 0x376   : > { %3397 = vmatmul.mubr.msk.f32.gmra.mxu1 %vm667_vm5, %v1774_v20  ;;  %3414 = vmatprep.subr.mxu1 %v1994_v43 }
 0x377   : > { %3415 = vmatpush3.msra.mxu1 %v1994_v43 }
 0x378   : > { %3416 = vmatprep.subr.mxu1 %v1993_v55 }
 0x379   : > { %3417 = vmatpush3.msra.mxu1 %v1993_v55 }
 0x37a   : > { %3432 = vmatprep.subr.mxu1 %v2176_v58 }
 0x432   : > { %v3395_v60 = vpop.f32.mrf.mxu1 }
 0x433   : > { %v1872_v49 = vadd.f32 %v3395_v60, %v3131_v42 }
 0x434   : > { %v1866_v38 = vpop.f32.mrf.mxu1 }
 0x435   : > { %v1886_v10 = vadd.f32 %v1872_v49, %v4229_v15  ;;  %v1867_v46 = vadd.f32 %v3131_v42, %v1866_v38 }
 0x436   : > { %v3398_v48 = vpop.f32.mrf.mxu1 }
 0x437   : > { %1890 = vst.msk [vmem:[#allocation2 + $0xa] sm:$0xff] %vm667_vm5, %v1886_v10  ;;  %v1885_v63 = vadd.f32 %v1867_v46, %v4234_v8  ;;  %v1882_v52 = vadd.f32 %v3398_v48, %v3131_v42  ;;  %v2085_v8 = vld [vmem:[#allocation3 + $0xf0] sm:$0xff] }
 0x438   : > { %v1876_v54 = vpop.f32.mrf.mxu1 }
 0x439   : > { %1889 = vst.msk [vmem:[#allocation2 + $0x2] sm:$0xff] %vm667_vm5, %v1885_v63  ;;  %v1888_v0 = vadd.f32 %v1882_v52, %v4244_v29  ;;  %v1877_v9 = vadd.f32 %v3131_v42, %v1876_v54 }
 0x43b   : > { %1892 = vst.msk [vmem:[#allocation2 + $0x1a] sm:$0xff] %vm667_vm5, %v1888_v0  ;;  %v1887_v13 = vadd.f32 %v1877_v9, %v4250_v14 }
 0x43d   : > { %1891 = vst.msk [vmem:[#allocation2 + $0x12] sm:$0xff] %vm667_vm5, %v1887_v13 }
 0x440   : > { %v1901_v15 = vld [vmem:[#allocation2] ss:$2 sm:$0xff]  ;;  %v1997_v21 = vld [vmem:[#allocation2 + $0x1] ss:$2 sm:$0xff] }
 0x441   : > { %3407 = vmatprep.mubr.msk.f32.mxu0 %vm667_vm5, %v1901_v15  ;;  %3418 = vmatprep.mubr.msk.f32.mxu1 %vm667_vm5, %v1997_v21  ;;  %v2087_v14 = vld [vmem:[#allocation2 + $0x2] ss:$2 sm:$0xff]  ;;  %v2177_v25 = vld [vmem:[#allocation2 + $0x3] ss:$2 sm:$0xff] }
 0x444   : > { %v1902_v22 = vld [vmem:[#allocation2 + $0x10] ss:$2 sm:$0xff]  ;;  %v1998_v16 = vld [vmem:[#allocation2 + $0x11] ss:$2 sm:$0xff] }
 0x445   : > { %3408 = vmatmul.mubr.msk.f32.vlgmr.msra.gmra.mxu0 %vm667_vm5, %v1902_v22  ;;  %3419 = vmatmul.mubr.msk.f32.vlgmr.msra.gmra.mxu1 %vm667_vm5, %v1998_v16  ;;  %v2088_v29 = vld [vmem:[#allocation2 + $0x12] ss:$2 sm:$0xff]  ;;  %v2178_v11 = vld [vmem:[#allocation2 + $0x13] ss:$2 sm:$0xff]  ;;  %v3149_v22 = vld [vmem:[%s4539_s2 + $0x8] sm:$0x7] }
 0x446   : > { %v2267_v23 = vld [vmem:[#allocation2 + $0x4] ss:$2 sm:$0xff]  ;;  %3422 = vmatpush3.msra.mxu0 %v2086_v57  ;;  %3433 = vmatpush3.msra.mxu1 %v2176_v58  ;;  %v2268_v40 = vld [vmem:[#allocation2 + $0x14] ss:$2 sm:$0xff]  ;;  %v2389_v57 = vrot.slane %v3148_v36, %v3843_v7  ;;  %v2363_v58 = vrot.slane %v3148_v36, %v3826_v2 }
 0x447   : > { %2584 = vst.msk [vmem:[#allocation2 + $0x12] sm:$0x3] %vm346_vm9, %v3697_v32  ;;  %3423 = vmatprep.subr.mxu0 %v2085_v8  ;;  %3429 = vmatprep.mubr.msk.f32.mxu0 %vm667_vm5, %v2087_v14 }
 0x448   : > { %3434 = vmatprep.subr.mxu1 %v2175_v56  ;;  %3440 = vmatprep.mubr.msk.f32.mxu1 %vm667_vm5, %v2177_v25  ;;  %v2405_v25 = vrot.slane %v3149_v22, %v3826_v2 }
 0x449   : > { %3424 = vmatpush3.msra.mxu0 %v2085_v8  ;;  %3435 = vmatpush3.msra.mxu1 %v2175_v56 }
 0x44a   : > { %3425 = vmatprep.subr.mxu0 %v2084_v26  ;;  %3436 = vmatprep.subr.mxu1 %v2174_v27 }
 0x44b   : > { %3426 = vmatpush3.msra.mxu0 %v2084_v26  ;;  %3437 = vmatpush3.msra.mxu1 %v2174_v27 }
 0x44c   : > { %3427 = vmatprep.subr.mxu0 %v2083_v28  ;;  %3438 = vmatprep.subr.mxu1 %v2173_v35 }
 0x44d   : > { %3428 = vmatpush3.msra.mxu0 %v2083_v28  ;;  %3439 = vmatpush3.msra.mxu1 %v2173_v35  ;;  %v2431_v35 = vrot.slane %v3149_v22, %v3843_v7 }
 0x44e   : > { %3430 = vmatmul.mubr.msk.f32.vlgmr.msra.gmra.mxu0 %vm667_vm5, %v2088_v29  ;;  %3441 = vmatmul.mubr.msk.f32.vlgmr.msra.gmra.mxu1 %vm667_vm5, %v2178_v11 }
 0x44f   : > { %3443 = vmatprep.subr.mxu0 %v2266_v30  ;;  %3451 = vmatprep.mubr.msk.f32.mxu0 %vm667_vm5, %v2267_v23  ;;  %v2411_v23 = vrot.slane %v3149_v22, %v3829_v3 }
 0x450   : > { %3444 = vmatpush3.msra.mxu0 %v2266_v30 }
 0x451   : > { %3445 = vmatprep.subr.mxu0 %v2265_v19 }
 0x452   : > { %3446 = vmatpush3.msra.mxu0 %v2265_v19 }
 0x453   : > { %3447 = vmatprep.subr.mxu0 %v2264_v12 }
 0x454   : > { %3448 = vmatpush3.msra.mxu0 %v2264_v12 }
 0x455   : > { %3449 = vmatprep.subr.mxu0 %v2263_v37 }
 0x456   : > { %3450 = vmatpush3.msra.mxu0 %v2263_v37 }
 0x457   : > { %3452 = vmatmul.mubr.msk.f32.vlgmr.msra.gmra.mxu0 %vm667_vm5, %v2268_v40  ;;  %3465 = vmatprep.subr.mxu0 %v3697_v32 }
 0x458   : > { %3473 = vmatprep.mubr.msk.f32.mxu0 %vm3698_vm14, %v3697_v32 }
 0x505   : > { %v3409_v59 = vpop.f32.mrf.mxu0  ;;  %v3420_v47 = vpop.f32.mrf.mxu1 }
 0x506   : > { %v1991_v45 = vadd.f32 %v3409_v59, %v3139_v51 }
 0x507   : > { %v1975_v24 = vpop.f32.mrf.mxu0  ;;  %v2071_v41 = vpop.f32.mrf.mxu1 }
 0x508   : > { %v1990_v61 = vadd.f32 %v3139_v51, %v1975_v24  ;;  %v2081_v34 = vadd.f32 %v3420_v47, %v1991_v45 }
 0x50a   : > { %v2080_v4 = vadd.f32 %v2071_v41, %v1990_v61 }
 0x50e   : > { %v3431_v53 = vpop.f32.mrf.mxu0  ;;  %v3442_v50 = vpop.f32.mrf.mxu1 }
 0x50f   : > { %v2171_v18 = vadd.f32 %v3431_v53, %v2081_v34 }
 0x510   : > { %v2161_v44 = vpop.f32.mrf.mxu0  ;;  %v2251_v20 = vpop.f32.mrf.mxu1 }
 0x511   : > { %v2170_v31 = vadd.f32 %v2161_v44, %v2080_v4  ;;  %v2261_v62 = vadd.f32 %v3442_v50, %v2171_v18 }
 0x513   : > { %v2260_v5 = vadd.f32 %v2251_v20, %v2170_v31  ;;  %v3157_v31 = vld [vmem:[%s4542_s5 + $0x58] sm:$0xff]  ;;  %v3155_v20 = vld [vmem:[%s4542_s5 + $0x48] sm:$0xff] }
 0x514   : > { %3454 = vmatprep.subr.mxu1 %v3157_v31 }
 0x515   : > { %3455 = vmatpush3.msra.mxu1 %v3157_v31 }
 0x517   : > { %v3453_v33 = vpop.f32.mrf.mxu0 }
 0x518   : > { %v4389_v39 = vadd.f32 %v3453_v33, %v2261_v62  ;;  %v3156_v62 = vld [vmem:[%s4542_s5 + $0x50] sm:$0xff]  ;;  %v3154_v33 = vld [vmem:[%s4542_s5 + $0x40] sm:$0xff] }
 0x519   : > { %v2341_v43 = vpop.f32.mrf.mxu0  ;;  %3456 = vmatprep.subr.mxu1 %v3156_v62 }
 0x51a   : > { %v4392_v55 = vadd.f32 %v2341_v43, %v2260_v5  ;;  %v2355_v42 = vrot.slane %v4389_v39, 7  ;;  %v2377_v60 = vrot.slane %v4389_v39, 1  ;;  %v2371_v10 = vmul.f32 %v2369_v17, %v4389_v39  ;;  %3457 = vmatpush3.msra.mxu1 %v3156_v62 }
 0x51b   : > { %3458 = vmatprep.subr.mxu1 %v3155_v20 }
 0x51c   : > { %v2354_v49 = vrot.slane %v4392_v55, 7  ;;  %v2376_v38 = vrot.slane %v4392_v55, 1  ;;  %v2370_v15 = vmul.f32 %v2369_v17, %v4392_v55  ;;  %3459 = vmatpush3.msra.mxu1 %v3155_v20 }
 0x51d   : > { %3460 = vmatprep.subr.mxu1 %v3154_v33 }
 0x51e   : > { %v2356_v46 = vsel %vm382_vm0, %v2354_v49, %v2355_v42  ;;  %v2357_v48 = vsel %vm382_vm0, %v2355_v42, %v2354_v49  ;;  %v2379_v63 = vsel %vm463_vm1, %v2377_v60, %v2376_v38  ;;  %v2378_v0 = vsel %vm463_vm1, %v2376_v38, %v2377_v60  ;;  %3461 = vmatpush3.msra.mxu1 %v3154_v33  ;;  %v3164_v33 = vld [vmem:[%s4545_s8 + $0x2] ss:$0 sm:$0xff] }
 0x51f   : > { %v2358_v52 = vsel %vm366_vm4, %v2357_v48, 0.0  ;;  %v2365_v54 = vmul.f32 %v2363_v58, %v2356_v46  ;;  %v2385_v9 = vsel %vm2375_vm12, %v2379_v63, 0.0  ;;  %v2390_v56 = vmul.f32 %v2389_v57, %v2378_v0  ;;  %3476 = vmatprep.subr.mxu1 %v3697_v32  ;;  %v3151_v0 = vld [vmem:[%s4540_s3 + $0x2] ss:$0 sm:$0xff] }
 0x520   : > { %v2364_v13 = vmul.f32 %v2363_v58, %v2358_v52  ;;  %v2391_v21 = vmul.f32 %v2389_v57, %v2385_v9 }
 0x521   : > { %v2373_v8 = vadd.f32 %v2371_v10, %v2365_v54 }
 0x522   : > { %v2372_v16 = vadd.f32 %v2370_v15, %v2364_v13 }
 0x523   : > { %v2393_v29 = vadd.f32 %v2391_v21, %v2373_v8  ;;  %v3153_v8 = vld [vmem:[%s4541_s4 + $0x2] ss:$0 sm:$0xff] }
 0x524   : > { %v2392_v11 = vadd.f32 %v2390_v56, %v2372_v16 }
 0x525   : > { %v2397_v14 = vrot.slane %v2393_v29, 5  ;;  %v2419_v26 = vrot.slane %v2393_v29, 3  ;;  %v2413_v19 = vmul.f32 %v2411_v23, %v2393_v29  ;;  %v2591_v29 = vld [vmem:[#allocation3 + $0x158] sm:$0xff] }
 0x526   : > { %v2396_v27 = vrot.slane %v2392_v11, 5  ;;  %v2418_v28 = vrot.slane %v2392_v11, 3  ;;  %v2412_v24 = vmul.f32 %v2411_v23, %v2392_v11  ;;  %v2677_v11 = vld [vmem:[#allocation3 + $0x178] sm:$0xff]  ;;  %3466 = vmatpush3.msra.mxu0 %v2591_v29  ;;  %v2590_v23 = vld [vmem:[#allocation3 + $0x150] sm:$0xff] }
 0x527   : > { %3467 = vmatprep.subr.mxu0 %v3697_v32 }
 0x528   : > { %v2398_v30 = vsel %vm533_vm2, %v2396_v27, %v2397_v14  ;;  %v2421_v12 = vsel %vm614_vm3, %v2419_v26, %v2418_v28  ;;  %v2399_v37 = vsel %vm533_vm2, %v2397_v14, %v2396_v27  ;;  %v2420_v59 = vsel %vm614_vm3, %v2418_v28, %v2419_v26  ;;  %v2676_v14 = vld [vmem:[#allocation3 + $0x170] sm:$0xff]  ;;  %v2675_v26 = vld [vmem:[#allocation3 + $0x168] sm:$0xff]  ;;  %3468 = vmatpush3.msra.mxu0 %v2590_v23  ;;  %v2588_v27 = vld [vmem:[#allocation3 + $0x140] sm:$0xff] }
 0x529   : > { %v2407_v3 = vmul.f32 %v2405_v25, %v2398_v30  ;;  %v2427_v40 = vsel %vm2417_vm13, %v2421_v12, 0.0  ;;  %v2400_v2 = vsel %vm517_vm7, %v2399_v37, 0.0  ;;  %v2432_v61 = vmul.f32 %v2431_v35, %v2420_v59  ;;  %3469 = vmatprep.subr.mxu0 %v3697_v32  ;;  %v2674_v28 = vld [vmem:[#allocation3 + $0x160] sm:$0xff]  ;;  %v2837_v59 = vld [vmem:[#allocation3 + $0x1b8] sm:$0xff] }
 0x52a   : > { %v2433_v51 = vmul.f32 %v2431_v35, %v2427_v40  ;;  %v2406_v7 = vmul.f32 %v2405_v25, %v2400_v2  ;;  %v2589_v25 = vld [vmem:[#allocation3 + $0x148] sm:$0xff]  ;;  %v3159_v35 = vld [vmem:[%s4543_s6 + $0x2] ss:$0 sm:$0xff] }
 0x52b   : > { %v2415_v45 = vadd.f32 %v2413_v19, %v2407_v3  ;;  %3470 = vmatpush3.msra.mxu0 %v2589_v25  ;;  %v2757_v2 = vld [vmem:[#allocation3 + $0x198] sm:$0xff] }
 0x52c   : > { %v2414_v47 = vadd.f32 %v2412_v24, %v2406_v7  ;;  %3471 = vmatprep.subr.mxu0 %v3697_v32  ;;  %v2756_v24 = vld [vmem:[#allocation3 + $0x190] sm:$0xff] }
 0x52d   : > { %v2435_v53 = vadd.f32 %v2433_v51, %v2415_v45  ;;  %3472 = vmatpush3.msra.mxu0 %v2588_v27  ;;  %v2836_v45 = vld [vmem:[#allocation3 + $0x1b0] sm:$0xff] }
 0x52e   : > { %v2434_v34 = vadd.f32 %v2432_v61, %v2414_v47  ;;  %3487 = vmatprep.subr.mxu0 %v3697_v32  ;;  %v2754_v47 = vld [vmem:[#allocation3 + $0x180] sm:$0xff] }
 0x52f   : > { %v2439_v41 = vsel %vm667_vm5, %v2435_v53, 0.0  ;;  %v2445_v44 = vmul.f32 %v2435_v53, %v2435_v53  ;;  %v2834_v61 = vld [vmem:[#allocation3 + $0x1a0] sm:$0xff] }
 0x530   : > { %2440 = vadd.xlane.f32.xlu1 %v2439_v41  ;;  %v2436_v4 = vsel %vm667_vm5, %v2434_v34, 0.0  ;;  %v2444_v18 = vmul.f32 %v2434_v34, %v2434_v34  ;;  %v2917_v41 = vld [vmem:[#allocation3 + $0x1d8] sm:$0xff] }
 0x531   : > { %2437 = vadd.xlane.f32.xlu0 %v2436_v4  ;;  %v2449_v50 = vsel %vm667_vm5, %v2445_v44, 0.0  ;;  %v2916_v44 = vld [vmem:[#allocation3 + $0x1d0] sm:$0xff]  ;;  %v2915_v4 = vld [vmem:[#allocation3 + $0x1c8] sm:$0xff] }
 0x532   : > { %v2446_v1 = vsel %vm667_vm5, %v2444_v18, 0.0  ;;  %v2914_v18 = vld [vmem:[#allocation3 + $0x1c0] sm:$0xff] }
 0x534   : > { %2450 = vadd.xlane.f32.xlu1 %v2449_v50 }
 0x535   : > { %2447 = vadd.xlane.f32.xlu0 %v2446_v1 }
 0x5b9   : > { %v2441_v36 = vpop.xlane.xlu1 %2440 }
 0x5ba   : > { %v2443_v6 = vmul.f32 0.03125, %v2441_v36  ;;  %v2438_v5 = vpop.xlane.xlu0 %2437 }
 0x5bb   : > { %v2442_v43 = vmul.f32 0.03125, %v2438_v5 }
 0x5bc   : > { %v2455_v57 = vmul.f32 %v2443_v6, %v2443_v6  ;;  %v2459_v63 = vsub.f32 %v2435_v53, %v2443_v6 }
 0x5bd   : > { %v2451_v17 = vpop.xlane.xlu1 %2450  ;;  %v2454_v60 = vmul.f32 %v2442_v43, %v2442_v43  ;;  %v2458_v54 = vsub.f32 %v2434_v34, %v2442_v43 }
 0x5be   : > { %v2453_v58 = vmul.f32 0.03125, %v2451_v17  ;;  %v2448_v42 = vpop.xlane.xlu0 %2447 }
 0x5bf   : > { %v2452_v49 = vmul.f32 0.03125, %v2448_v42 }
 0x5c0   : > { %v2457_v38 = vsub.f32 %v2453_v58, %v2455_v57 }
 0x5c1   : > { %v2456_v10 = vsub.f32 %v2452_v49, %v2454_v60 }
 0x5c2   : > { %v2461_v46 = vadd.f32 1e-06, %v2457_v38 }
 0x5c3   : > { %v2460_v48 = vadd.f32 1e-06, %v2456_v10 }
 0x5c4   : > { %3598 = vrsqrt.f32 %v2461_v46 }
 0x5c5   : > { %3600 = vrsqrt.f32 %v2460_v48 }
 0x5d1   : > { %v3599_v52 = vpop.eup %3598 }
 0x5d2   : > { %v3601_v9 = vpop.eup %3600  ;;  %v2465_v13 = vmul.f32 %v3599_v52, %v2459_v63 }
 0x5d3   : > { %v2464_v15 = vmul.f32 %v3601_v9, %v2458_v54 }
 0x5d4   : > { %v2475_v21 = vmul.f32 %v3151_v0, %v2465_v13 }
 0x5d5   : > { %v2474_v22 = vmul.f32 %v3151_v0, %v2464_v15 }
 0x5d6   : > { %v2485_v56 = vadd.f32 %v3153_v8, %v2475_v21 }
 0x5d7   : > { %v2484_v16 = vadd.f32 %v3153_v8, %v2474_v22 }
 0x5d9   : > { %3462 = vmatprep.mubr.msk.f32.mxu1 %vm667_vm5, %v2484_v16 }
 0x5da   : > { %3463 = vmatmul.mubr.msk.f32.vlgmr.msra.gmra.mxu1 %vm667_vm5, %v2485_v56 }
 0x5db   : > { %3477 = vmatpush3.msra.mxu1 %v2677_v11  ;;  %3484 = vmatprep.mubr.msk.f32.mxu1 %vm3698_vm14, %v3697_v32 }
 0x5dc   : > { %3478 = vmatprep.subr.mxu1 %v3697_v32 }
 0x5dd   : > { %3479 = vmatpush3.msra.mxu1 %v2676_v14 }
 0x5de   : > { %3480 = vmatprep.subr.mxu1 %v3697_v32 }
 0x5df   : > { %3481 = vmatpush3.msra.mxu1 %v2675_v26 }
 0x5e0   : > { %3482 = vmatprep.subr.mxu1 %v3697_v32 }
 0x5e1   : > { %3483 = vmatpush3.msra.mxu1 %v2674_v28 }
 0x5e2   : > { %3498 = vmatprep.subr.mxu1 %v3697_v32 }
 0x69a   : > { %v3464_v30 = vpop.f32.mrf.mxu1 }
 0x69b   : > { %v2577_v19 = vadd.f32 %v3464_v30, %v3159_v35 }
 0x69c   : > { %v2571_v12 = vpop.f32.mrf.mxu1 }
 0x69d   : > { %v2581_v37 = vadd.f32 %v2577_v19, %v4389_v39  ;;  %v2572_v3 = vadd.f32 %v3159_v35, %v2571_v12  ;;  %v2755_v39 = vld [vmem:[#allocation3 + $0x188] sm:$0xff] }
 0x69f   : > { %2583 = vst.msk [vmem:[#allocation2 + $0xa] sm:$0xff] %vm667_vm5, %v2581_v37  ;;  %v2580_v40 = vadd.f32 %v2572_v3, %v4392_v55  ;;  %v2835_v55 = vld [vmem:[#allocation3 + $0x1a8] sm:$0xff] }
 0x6a1   : > { %2582 = vst.msk [vmem:[#allocation2 + $0x2] sm:$0xff] %vm667_vm5, %v2580_v40 }
 0x6a8   : > { %v2592_v51 = vld [vmem:[#allocation2] ss:$2 sm:$0xff]  ;;  %v2678_v7 = vld [vmem:[#allocation2 + $0x1] ss:$2 sm:$0xff] }
 0x6a9   : > { %3474 = vmatmul.mubr.msk.f32.vlgmr.msra.gmra.mxu0 %vm667_vm5, %v2592_v51  ;;  %3485 = vmatmul.mubr.msk.f32.vlgmr.msra.gmra.mxu1 %vm667_vm5, %v2678_v7  ;;  %v2758_v53 = vld [vmem:[#allocation2 + $0x2] ss:$2 sm:$0xff]  ;;  %v2838_v34 = vld [vmem:[#allocation2 + $0x3] ss:$2 sm:$0xff] }
 0x6aa   : > { %3488 = vmatpush3.msra.mxu0 %v2757_v2  ;;  %3499 = vmatpush3.msra.mxu1 %v2837_v59  ;;  %v2918_v50 = vld [vmem:[#allocation2 + $0x4] ss:$2 sm:$0xff] }
 0x6ab   : > { %3489 = vmatprep.subr.mxu0 %v3697_v32  ;;  %3500 = vmatprep.subr.mxu1 %v3697_v32 }
 0x6ac   : > { %3490 = vmatpush3.msra.mxu0 %v2756_v24  ;;  %3501 = vmatpush3.msra.mxu1 %v2836_v45 }
 0x6ad   : > { %3491 = vmatprep.subr.mxu0 %v3697_v32  ;;  %3502 = vmatprep.subr.mxu1 %v3697_v32 }
 0x6ae   : > { %3492 = vmatpush3.msra.mxu0 %v2755_v39  ;;  %3503 = vmatpush3.msra.mxu1 %v2835_v55 }
 0x6af   : > { %3493 = vmatprep.subr.mxu0 %v3697_v32  ;;  %3504 = vmatprep.subr.mxu1 %v3697_v32 }
 0x6b0   : > { %3494 = vmatpush3.msra.mxu0 %v2754_v47  ;;  %3495 = vmatprep.mubr.msk.f32.mxu0 %vm3698_vm14, %v3697_v32 }
 0x6b1   : > { %3505 = vmatpush3.msra.mxu1 %v2834_v61  ;;  %3506 = vmatprep.mubr.msk.f32.mxu1 %vm3698_vm14, %v3697_v32 }
 0x6b2   : > { %3496 = vmatmul.mubr.msk.f32.vlgmr.msra.gmra.mxu0 %vm667_vm5, %v2758_v53  ;;  %3507 = vmatmul.mubr.msk.f32.vlgmr.msra.gmra.mxu1 %vm667_vm5, %v2838_v34 }
 0x6b3   : > { %3509 = vmatprep.subr.mxu0 %v3697_v32  ;;  %3517 = vmatprep.mubr.msk.f32.mxu0 %vm3698_vm14, %v3697_v32 }
 0x6b4   : > { %3510 = vmatpush3.msra.mxu0 %v2917_v41 }
 0x6b5   : > { %3511 = vmatprep.subr.mxu0 %v3697_v32 }
 0x6b6   : > { %3512 = vmatpush3.msra.mxu0 %v2916_v44 }
 0x6b7   : > { %3513 = vmatprep.subr.mxu0 %v3697_v32 }
 0x6b8   : > { %3514 = vmatpush3.msra.mxu0 %v2915_v4 }
 0x6b9   : > { %3515 = vmatprep.subr.mxu0 %v3697_v32 }
 0x6ba   : > { %3516 = vmatpush3.msra.mxu0 %v2914_v18 }
 0x6bb   : > { %3518 = vmatmul.mubr.msk.f32.vlgmr.msra.gmra.mxu0 %vm667_vm5, %v2918_v50 }
 0x769   : > { %v2662_v1 = vpop.f32.mrf.mxu0  ;;  %v2748_v31 = vpop.f32.mrf.mxu1 }
 0x76a   : > { %v2672_v36 = vadd.f32 %v3164_v33, %v2662_v1 }
 0x76b   : > { %v3475_v62 = vpop.f32.mrf.mxu0  ;;  %v3486_v20 = vpop.f32.mrf.mxu1 }
 0x76c   : > { %v2752_v43 = vadd.f32 %v2748_v31, %v2672_v36 }
 0x772   : > { %v2828_v6 = vpop.f32.mrf.mxu0  ;;  %v2908_v5 = vpop.f32.mrf.mxu1 }
 0x773   : > { %v2832_v57 = vadd.f32 %v2828_v6, %v2752_v43 }
 0x774   : > { %v3497_v32 = vpop.f32.mrf.mxu0  ;;  %v3508_v17 = vpop.f32.mrf.mxu1 }
 0x775   : > { %v2912_v58 = vadd.f32 %v2908_v5, %v2832_v57 }
 0x77b   : > { %v2988_v42 = vpop.f32.mrf.mxu0 }
 0x77c   : > { %v2992_v60 = vadd.f32 %v2988_v42, %v2912_v58 }
 0x77d   : > { %v3519_v49 = vpop.f32.mrf.mxu0 }
 0x77e   : > { %2993 = vst.msk [vmem:[%s340_s25] sm:$0xff] %vm667_vm5, %v2992_v60 }
 0x77f   : > { %3641 = shalt.err (!%p3638_p0)
}
 0x780   : > { %s3642_s23 = scalar_lea.hbm %s4501_s29, 128  ;;  %s3646_s25 = scalar_lea.hbm %s4546_s9, 256 }
 0x781   : > { %p3643_p1 = scmp.ne.s32.totalorder %s4501_s29, %s3642_s23  ;;  %p3647_p4 = scmp.lt.s32.totalorder %s4501_s29, %s4546_s9 }
 0x782   : > { %p3648_p7 = scmp.lt.s32.totalorder %s3646_s25, %s3642_s23 }
 0x783   : > { %p3644_p2 = pnand %p3643_p1, %p3788_p5 }
 0x784   : > { %p3649_p8 = por %p3648_p7, %p3647_p4 }
 0x785   : > { %p3645_p3 = pneg %p3644_p2 }
 0x787   : > { %p3650_p6 = pnand %p3649_p8, %p3645_p3 }
 0x789   : > { %3653 = shalt.err (!%p3650_p6)
}
 0x78a   : > { %3524 = dma.vmem_to_hbm [thread:$0]  (%p3788_p5), %s3009_s26, 128, %s4501_s29, %s2995_s14  }
 0x78b PF: > { %p3536_p9 = scmp.ge.s32.totalorder %s3692_s12, 2  ;;  %s3020_s16 = sand.u32 1, %s3680_s30  }
 0x78c   : > { %p4550_p10 = scmp.ne.s32.totalorder %s4548_s20, 0  ;;  %s3021_s13 = scalar_lea.sflag [#allocation5], %s3020_s16 }
 0x78e   : > { %p3531_p11 = pnand %p3536_p9, %p4550_p10 }
 0x790   : > { %p3532_p12 = pneg %p3531_p11 }
 0x792   : > { %3675 = dma.done.wait (%p3532_p12), %s3021_s13, 128  }
 0x793   : > { %3677 = vsyncadd (%p3532_p12), %s3021_s13, 4294967168  ;;  %p20_p13 = scmp.ge.s32.totalorder %s3775_s15, 4   ;;  %s4551_s30 = smov %s3684_s10 }
 0x794   : > { %s4552_s10 = smov %s3688_s11  ;;  %s4553_s11 = smov %s3786_s18 }
 0x795   : > { %s4554_s12 = smov %s3775_s15  ;;  %22 = sbr.rel (!%p20_p13) target bundleno = 4 (0x4), region = 143 }
 0x79a   :  { %3026 = vsyncpa [#allocation4], 1 }
 0x79b   :  { %3028 = vsyncpa [#allocation4 + $0x1], 1 }
 0x79c   :  { %3029 = vsyncpa [#allocation5], 1 }
 0x79d   :  { %3031 = vsyncpa [#allocation5 + $0x1], 1 }

</bundles_post_ra>
